<compile_context>
chip_gen: v7x
topology: tpu7x:2x2x1
jax: 0.10.0
libtpu: 0.0.40
codegen_flags: <defaults>
</compile_context>

<pallas_src>
import functools

import numpy as np
import jax
import jax.numpy as jnp
from jax import lax
from jax.experimental import pallas as pl
from jax.experimental.pallas import tpu as pltpu

_EPS = 1e-3                       # BatchNorm1d(eps=0.001)
_COMPUTE_DTYPE = jnp.bfloat16     # MXU operand dtype (accumulation stays f32)
_VMEM_LIMIT = 48 * 1024 * 1024    # sized for v7x's 64 MiB/TC with headroom


def _cparams():
    return pltpu.CompilerParams(
        dimension_semantics=("parallel", "parallel"),
        vmem_limit_bytes=_VMEM_LIMIT)


# ---------------------------------------------------------------------------
# In-kernel helpers.  All tiles are (C, tl): channels on sublanes, L on lanes.
# ---------------------------------------------------------------------------
def _shift_halo(center, left, right, d, lane, gpos, seq_len, tl, oob):
    """Tile holding global positions gpos + d, merged from neighbour tiles.

    `left` / `right` are the (clamped) neighbouring L tiles.  Positions that
    fall outside [0, seq_len) are replaced by `oob` (0.0 for conv zero padding,
    the center tile for max-pool identity).
    """
    if d == 0:
        return center
    if d > 0:
        rc = pltpu.roll(center, tl - d, axis=1)   # rc[l] = center[(l + d) % tl]
        rr = pltpu.roll(right, tl - d, axis=1)
        merged = jnp.where(lane < tl - d, rc, rr)
        return jnp.where(gpos < seq_len - d, merged, oob)
    e = -d
    rc = pltpu.roll(center, e, axis=1)            # rc[l] = center[(l - e) % tl]
    rl = pltpu.roll(left, e, axis=1)
    merged = jnp.where(lane >= e, rc, rl)
    return jnp.where(gpos >= e, merged, oob)


def _tile_stats(y):
    """Per-channel partial sum / sum-of-squares over this tile (f32)."""
    s = jnp.sum(y, axis=1, keepdims=True)
    ss = jnp.sum(y * y, axis=1, keepdims=True)
    return jnp.concatenate([s, ss], axis=1)       # (C, 2)


def _bn_relu(y, scale, shift):
    """Folded training-mode BN + ReLU: max(y*scale + shift, 0)."""
    return jnp.maximum(y * scale + shift, 0.0)


# ---------------------------------------------------------------------------
# Stage 1: fused 1x1 convs (b1 / b2a / b3a) + maxpool->1x1 (b4), pre-BN spill
#          + per-tile BN statistics.
# ---------------------------------------------------------------------------
def _stage1_kernel(xl_ref, xc_ref, xr_ref, w123_ref, w4_ref,
                   y1_ref, y2a_ref, y3a_ref, y4_ref,
                   st1_ref, st2a_ref, st3a_ref, st4_ref,
                   *, o11, o21, o31, seq_len, tl):
    i = pl.program_id(1)
    lane = lax.broadcasted_iota(jnp.int32, (1, tl), 1)   # hoisted, reused below
    gpos = i * tl + lane                                  # global L position

    xc = xc_ref[...]
    xl = xl_ref[...]
    xr = xr_ref[...]
    xcb = xc.astype(_COMPUTE_DTYPE)

    # Branches 1 / 2a / 3a: one wide MXU matmul over the fused 1x1 weights.
    y123 = jnp.dot(w123_ref[...], xcb, preferred_element_type=jnp.float32)
    y1 = y123[:o11]
    y2a = y123[o11:o11 + o21]
    y3a = y123[o11 + o21:o11 + o21 + o31]

    # Branch 4: MaxPool1d(3, stride 1, pad 1) along L (out-of-range taps are
    # replaced by the center element -- identity under max), then 1x1 conv.
    lt = _shift_halo(xc, xl, xr, -1, lane, gpos, seq_len, tl, xc)
    rt = _shift_halo(xc, xl, xr, +1, lane, gpos, seq_len, tl, xc)
    pooled = jnp.maximum(jnp.maximum(lt, xc), rt)
    y4 = jnp.dot(w4_ref[...], pooled.astype(_COMPUTE_DTYPE),
                 preferred_element_type=jnp.float32)

    y1_ref[...] = y1
    y2a_ref[...] = y2a
    y3a_ref[...] = y3a
    y4_ref[...] = y4
    st1_ref[...] = _tile_stats(y1)
    st2a_ref[...] = _tile_stats(y2a)
    st3a_ref[...] = _tile_stats(y3a)
    st4_ref[...] = _tile_stats(y4)


# ---------------------------------------------------------------------------
# Stage 2: BN1+ReLU, then 3-tap / 5-tap 'same' convs with exact cross-tile
#          halos, pre-BN spill + per-tile stats for BN2.
# ---------------------------------------------------------------------------
def _stage2_kernel(y2l_ref, y2c_ref, y2r_ref, y3l_ref, y3c_ref, y3r_ref,
                   sc2a_ref, sh2a_ref, sc3a_ref, sh3a_ref,
                   w2b_ref, w3b_ref,
                   y2b_ref, y3b_ref, st2b_ref, st3b_ref,
                   *, k2, k3, seq_len, tl):
    i = pl.program_id(1)
    lane = lax.broadcasted_iota(jnp.int32, (1, tl), 1)
    gpos = i * tl + lane

    def branch(yl_ref, yc_ref, yr_ref, sc_ref, sh_ref, w_ref, k, out_ch):
        sc = sc_ref[...]
        sh = sh_ref[...]
        hl = _bn_relu(yl_ref[...], sc, sh)
        hc = _bn_relu(yc_ref[...], sc, sh)
        hr = _bn_relu(yr_ref[...], sc, sh)
        pad = k // 2
        acc = jnp.zeros((out_ch, tl), jnp.float32)
        for t in range(k):                         # K full matmuls, f32 accumulate
            tap = _shift_halo(hc, hl, hr, t - pad, lane, gpos, seq_len, tl, 0.0)
            acc = acc + jnp.dot(w_ref[t], tap.astype(_COMPUTE_DTYPE),
                                preferred_element_type=jnp.float32)
        return acc

    y2b = branch(y2l_ref, y2c_ref, y2r_ref, sc2a_ref, sh2a_ref, w2b_ref,
                 k2, y2b_ref.shape[0])
    y3b = branch(y3l_ref, y3c_ref, y3r_ref, sc3a_ref, sh3a_ref, w3b_ref,
                 k3, y3b_ref.shape[0])

    y2b_ref[...] = y2b
    y3b_ref[...] = y3b
    st2b_ref[...] = _tile_stats(y2b)
    st3b_ref[...] = _tile_stats(y3b)


# ---------------------------------------------------------------------------
# Stage 3: apply all four BN+ReLU and write one lane-dense NCL output slab.
# ---------------------------------------------------------------------------
def _stage3_kernel(y1_ref, y2b_ref, y3b_ref, y4_ref,
                   sc1_ref, sh1_ref, sc2b_ref, sh2b_ref,
                   sc3b_ref, sh3b_ref, sc4_ref, sh4_ref,
                   out_ref, *, o11, o23, o35):
    c0 = o11
    c1 = o11 + o23
    c2 = o11 + o23 + o35
    out_ref[:c0, :] = _bn_relu(y1_ref[...], sc1_ref[...], sh1_ref[...])
    out_ref[c0:c1, :] = _bn_relu(y2b_ref[...], sc2b_ref[...], sh2b_ref[...])
    out_ref[c1:c2, :] = _bn_relu(y3b_ref[...], sc3b_ref[...], sh3b_ref[...])
    out_ref[c2:, :] = _bn_relu(y4_ref[...], sc4_ref[...], sh4_ref[...])


# ---------------------------------------------------------------------------
# Wrapper: tiling, weight prep, three pallas_calls, global BN scale/shift.
# ---------------------------------------------------------------------------
def _pick_tile(seq_len, tl=None):
    if tl is None:
        for cand in (512, 256, 128):
            if seq_len % cand == 0:
                tl = cand
                break
        else:
            tl = seq_len
    assert seq_len % tl == 0, "L must be a multiple of the L tile"
    assert tl % 128 == 0 or tl == seq_len, "L tile must be lane-aligned or full"
    assert tl >= 8, "degenerate sequence length"
    return tl


def _scale_shift(stats, gamma, beta, count):
    """Fold global BN stats into a single per-channel (scale, shift) pair.

    stats: (N, GL, C, 2) per-tile [sum, sumsq].  Kept in f32 throughout
    (single-pass variance; fine in f32 at these magnitudes).
    """
    tot = jnp.sum(stats, axis=(0, 1))             # (C, 2)
    mean = tot[:, 0] / count
    var = tot[:, 1] / count - mean * mean         # biased, matches torch train mode
    scale = gamma * lax.rsqrt(var + _EPS)
    shift = beta - mean * scale
    return scale[:, None].astype(jnp.float32), shift[:, None].astype(jnp.float32)


def inception_forward(x, params, tl=None):
    """x: (N, Cin, L) float32.  Returns (N, o11+o23+o35+o41, L) == torch.cat(dim=1)."""
    n, cin, seq_len = x.shape
    o11 = params["w1"].shape[0]
    o21 = params["w2a"].shape[0]
    o31 = params["w3a"].shape[0]
    o41 = params["w4"].shape[0]
    o23 = params["w2b"].shape[0]
    o35 = params["w3b"].shape[0]
    k2 = params["w2b"].shape[2]
    k3 = params["w3b"].shape[2]
    ctot = o11 + o23 + o35 + o41

    tl = _pick_tile(seq_len, tl)
    gl = seq_len // tl
    grid = (n, gl)
    count = float(n * seq_len)

    # One-time weight prep (tiny): fuse the three 1x1 weights along Cout, put
    # K-tap weights in (K, Cout, Cin) layout, cast MXU operands to bf16.
    # Conv biases are dropped: a constant bias ahead of training-mode BN
    # cancels exactly under the mean subtraction.
    w123 = jnp.concatenate([params["w1"], params["w2a"], params["w3a"]],
                           axis=0).astype(_COMPUTE_DTYPE)            # (o11+o21+o31, Cin)
    w4 = params["w4"].astype(_COMPUTE_DTYPE)                         # (o41, Cin)
    w2b = jnp.moveaxis(params["w2b"], 2, 0).astype(_COMPUTE_DTYPE)   # (k2, o23, o21)
    w3b = jnp.moveaxis(params["w3b"], 2, 0).astype(_COMPUTE_DTYPE)   # (k3, o35, o31)

    # -- BlockSpec builders ---------------------------------------------------
    def tile_spec(ch, off=0):
        # (N, ch, L) array tiled as (ch, tl) blocks; off selects the (clamped)
        # left / right neighbour tile used for exact cross-tile halos.
        if off == 0:
            imap = lambda b, i: (b, 0, i)
        elif off < 0:
            imap = lambda b, i: (b, 0, jnp.maximum(i - 1, 0))
        else:
            imap = lambda b, i: (b, 0, jnp.minimum(i + 1, gl - 1))
        return pl.BlockSpec((None, ch, tl), imap)

    def const_spec(shape):
        # weights / BN vectors: constant index map -> stay VMEM-resident.
        return pl.BlockSpec(shape, lambda b, i: (0,) * len(shape))

    def stats_spec(ch):
        return pl.BlockSpec((None, None, ch, 2), lambda b, i: (b, i, 0, 0))

    f32 = jnp.float32

    # -- Stage 1 ---------------------------------------------------------------
    stage1 = pl.pallas_call(
        functools.partial(_stage1_kernel, o11=o11, o21=o21, o31=o31,
                          seq_len=seq_len, tl=tl),
        grid=grid,
        in_specs=[tile_spec(cin, -1), tile_spec(cin, 0), tile_spec(cin, +1),
                  const_spec(w123.shape), const_spec(w4.shape)],
        out_specs=(tile_spec(o11), tile_spec(o21), tile_spec(o31), tile_spec(o41),
                   stats_spec(o11), stats_spec(o21), stats_spec(o31), stats_spec(o41)),
        out_shape=(jax.ShapeDtypeStruct((n, o11, seq_len), f32),
                   jax.ShapeDtypeStruct((n, o21, seq_len), f32),
                   jax.ShapeDtypeStruct((n, o31, seq_len), f32),
                   jax.ShapeDtypeStruct((n, o41, seq_len), f32),
                   jax.ShapeDtypeStruct((n, gl, o11, 2), f32),
                   jax.ShapeDtypeStruct((n, gl, o21, 2), f32),
                   jax.ShapeDtypeStruct((n, gl, o31, 2), f32),
                   jax.ShapeDtypeStruct((n, gl, o41, 2), f32)),
        compiler_params=_cparams(),
    )
    y1, y2a, y3a, y4, st1, st2a, st3a, st4 = stage1(x, x, x, w123, w4)

    # Global BN1 scale/shift (tiny per-channel XLA ops).
    sc1, sh1 = _scale_shift(st1, params["g1"], params["be1"], count)
    sc2a, sh2a = _scale_shift(st2a, params["g2a"], params["be2a"], count)
    sc3a, sh3a = _scale_shift(st3a, params["g3a"], params["be3a"], count)
    sc4, sh4 = _scale_shift(st4, params["g4"], params["be4"], count)

    # -- Stage 2 ---------------------------------------------------------------
    stage2 = pl.pallas_call(
        functools.partial(_stage2_kernel, k2=k2, k3=k3, seq_len=seq_len, tl=tl),
        grid=grid,
        in_specs=[tile_spec(o21, -1), tile_spec(o21, 0), tile_spec(o21, +1),
                  tile_spec(o31, -1), tile_spec(o31, 0), tile_spec(o31, +1),
                  const_spec((o21, 1)), const_spec((o21, 1)),
                  const_spec((o31, 1)), const_spec((o31, 1)),
                  const_spec(w2b.shape), const_spec(w3b.shape)],
        out_specs=(tile_spec(o23), tile_spec(o35), stats_spec(o23), stats_spec(o35)),
        out_shape=(jax.ShapeDtypeStruct((n, o23, seq_len), f32),
                   jax.ShapeDtypeStruct((n, o35, seq_len), f32),
                   jax.ShapeDtypeStruct((n, gl, o23, 2), f32),
                   jax.ShapeDtypeStruct((n, gl, o35, 2), f32)),
        compiler_params=_cparams(),
    )
    y2b, y3b, st2b, st3b = stage2(y2a, y2a, y2a, y3a, y3a, y3a,
                                  sc2a, sh2a, sc3a, sh3a, w2b, w3b)

    sc2b, sh2b = _scale_shift(st2b, params["g2b"], params["be2b"], count)
    sc3b, sh3b = _scale_shift(st3b, params["g3b"], params["be3b"], count)

    # -- Stage 3: single lane-dense NCL output slab ----------------------------
    stage3 = pl.pallas_call(
        functools.partial(_stage3_kernel, o11=o11, o23=o23, o35=o35),
        grid=grid,
        in_specs=[tile_spec(o11), tile_spec(o23), tile_spec(o35), tile_spec(o41),
                  const_spec((o11, 1)), const_spec((o11, 1)),
                  const_spec((o23, 1)), const_spec((o23, 1)),
                  const_spec((o35, 1)), const_spec((o35, 1)),
                  const_spec((o41, 1)), const_spec((o41, 1))],
        out_specs=pl.BlockSpec((None, ctot, tl), lambda b, i: (b, 0, i)),
        out_shape=jax.ShapeDtypeStruct((n, ctot, seq_len), f32),
        compiler_params=_cparams(),
    )
    return stage3(y1, y2b, y3b, y4,
                  sc1, sh1, sc2b, sh2b, sc3b, sh3b, sc4, sh4)


# ---------------------------------------------------------------------------
# Pure-JAX reference (mirrors the PyTorch module in train() mode, including
# conv biases, zero-padded shifts, -inf maxpool padding and two-pass BN stats;
# matmul operands are cast to bf16 exactly like the kernel so the comparison
# stays tight).
# ---------------------------------------------------------------------------
def _mm_ref(x_nlc, w_oc_ic):
    n, l, c = x_nlc.shape
    y = jnp.dot(x_nlc.reshape(n * l, c).astype(_COMPUTE_DTYPE),
                w_oc_ic.astype(_COMPUTE_DTYPE).T,
                preferred_element_type=jnp.float32)
    return y.reshape(n, l, -1)


def _shift_ref(a, off):
    if off == 0:
        return a
    n, l, c = a.shape
    z = jnp.zeros((n, abs(off), c), a.dtype)
    if off > 0:
        return jnp.concatenate([a[:, off:, :], z], axis=1)
    return jnp.concatenate([z, a[:, :l + off, :]], axis=1)


def _convk_ref(h, w, b):
    k = w.shape[2]
    pad = k // 2
    n, l, _ = h.shape
    acc = jnp.zeros((n, l, w.shape[0]), jnp.float32)
    for t in range(k):
        acc = acc + _mm_ref(_shift_ref(h, t - pad), w[:, :, t])
    return acc + b[None, None, :]


def _bn_relu_ref(y, gamma, beta):
    n, l, c = y.shape
    y2 = y.reshape(n * l, c)
    mean = jnp.mean(y2, axis=0)
    var = jnp.mean(jnp.square(y2 - mean), axis=0)
    yn = (y - mean) * lax.rsqrt(var + _EPS)
    return jnp.maximum(yn * gamma + beta, 0.0)


def _maxpool3_ref(x):
    n, l, c = x.shape
    neg = jnp.full((n, 1, c), -jnp.inf, x.dtype)
    left = jnp.concatenate([neg, x[:, :l - 1, :]], axis=1)
    right = jnp.concatenate([x[:, 1:, :], neg], axis=1)
    return jnp.maximum(jnp.maximum(left, x), right)


def inception_ref(x_ncl, p):
    x = jnp.transpose(x_ncl, (0, 2, 1))
    o1 = _bn_relu_ref(_mm_ref(x, p["w1"]) + p["b1"], p["g1"], p["be1"])
    h2 = _bn_relu_ref(_mm_ref(x, p["w2a"]) + p["b2a"], p["g2a"], p["be2a"])
    o2 = _bn_relu_ref(_convk_ref(h2, p["w2b"], p["b2b"]), p["g2b"], p["be2b"])
    h3 = _bn_relu_ref(_mm_ref(x, p["w3a"]) + p["b3a"], p["g3a"], p["be3a"])
    o3 = _bn_relu_ref(_convk_ref(h3, p["w3b"], p["b3b"]), p["g3b"], p["be3b"])
    o4 = _bn_relu_ref(_mm_ref(_maxpool3_ref(x), p["w4"]) + p["b4"], p["g4"], p["be4"])
    return jnp.transpose(jnp.concatenate([o1, o2, o3, o4], axis=-1), (0, 2, 1))


def init_params(key, in_ch, o11, o21, o23, o31, o35, o41):
    ks = iter(jax.random.split(key, 32))

    def w(shape):
        return jax.random.normal(next(ks), shape, jnp.float32) * 0.2

    def vec(m, base=0.0, scale=0.1):
        return base + jax.random.normal(next(ks), (m,), jnp.float32) * scale

    return {
        # torch Conv1d weight layout: (Cout, Cin[, K])
        "w1":  w((o11, in_ch)),     "b1":  vec(o11), "g1":  vec(o11, 1.0), "be1":  vec(o11),
        "w2a": w((o21, in_ch)),     "b2a": vec(o21), "g2a": vec(o21, 1.0), "be2a": vec(o21),
        "w2b": w((o23, o21, 3)),    "b2b": vec(o23), "g2b": vec(o23, 1.0), "be2b": vec(o23),
        "w3a": w((o31, in_ch)),     "b3a": vec(o31), "g3a": vec(o31, 1.0), "be3a": vec(o31),
        "w3b": w((o35, o31, 5)),    "b3b": vec(o35), "g3b": vec(o35, 1.0), "be3b": vec(o35),
        "w4":  w((o41, in_ch)),     "b4":  vec(o41), "g4":  vec(o41, 1.0), "be4":  vec(o41),
    }


if __name__ == "__main__":
    key = jax.random.PRNGKey(0)
    kx, kp = jax.random.split(key)

    N, C_IN, L = 2, 4, 512
    O11, O21, O23, O31, O35, O41 = 4, 3, 6, 3, 5, 2   # total out channels = 17

    x = jax.random.normal(kx, (N, C_IN, L), jnp.float32)
    params = init_params(kp, C_IN, O11, O21, O23, O31, O35, O41)

    # tl=128 -> 4 L tiles: exercises the cross-tile halo path and the (N, GL) grid.
    fwd = jax.jit(functools.partial(inception_forward, tl=128))
    out = jax.block_until_ready(fwd(x, params))
    assert out.shape == (N, O11 + O23 + O35 + O41, L), out.shape

    ref = jax.block_until_ready(inception_ref(x, params))
    # Tolerance reflects bf16 MXU operands (mirrored in the reference); typical
    # deviation is far smaller, the bound covers occasional 1-ulp bf16 flips.
    np.testing.assert_allclose(np.asarray(out), np.asarray(ref), rtol=1e-2, atol=1e-2)

    print("KERNEL_OK")
</pallas_src>

<mosaic_0001>
module attributes {stable_mosaic.version = 11 : i64} {
  func.func @_stage1_kernel(%arg0: i32, %arg1: i32, %arg2: memref<1x4x128xf32, #tpu.memory_space<vmem>>, %arg3: memref<1x4x128xf32, #tpu.memory_space<vmem>>, %arg4: memref<1x4x128xf32, #tpu.memory_space<vmem>>, %arg5: memref<10x4xbf16, #tpu.memory_space<vmem>>, %arg6: memref<2x4xbf16, #tpu.memory_space<vmem>>, %arg7: memref<1x4x128xf32, #tpu.memory_space<vmem>>, %arg8: memref<1x3x128xf32, #tpu.memory_space<vmem>>, %arg9: memref<1x3x128xf32, #tpu.memory_space<vmem>>, %arg10: memref<1x2x128xf32, #tpu.memory_space<vmem>>, %arg11: memref<1x1x4x2xf32, #tpu.memory_space<vmem>>, %arg12: memref<1x1x3x2xf32, #tpu.memory_space<vmem>>, %arg13: memref<1x1x3x2xf32, #tpu.memory_space<vmem>>, %arg14: memref<1x1x2x2xf32, #tpu.memory_space<vmem>>) attributes {dimension_semantics = [#tpu.dimension_semantics<parallel>, #tpu.dimension_semantics<parallel>], iteration_bounds = array<i64: 2, 4>, scalar_prefetch = 0 : i64, scratch_operands = 0 : i64, tpu.core_type = #tpu.core_type<tc>, window_params = [{transform_indices = @transform_0, window_bounds = array<i64: 1, 4, 128>}, {transform_indices = @transform_1, window_bounds = array<i64: 1, 4, 128>}, {transform_indices = @transform_2, window_bounds = array<i64: 1, 4, 128>}, {pipeline_mode = #tpu.pipeline_mode<synchronous>, transform_indices = @transform_3, window_bounds = array<i64: 10, 4>}, {pipeline_mode = #tpu.pipeline_mode<synchronous>, transform_indices = @transform_4, window_bounds = array<i64: 2, 4>}, {transform_indices = @transform_5, window_bounds = array<i64: 1, 4, 128>}, {transform_indices = @transform_6, window_bounds = array<i64: 1, 3, 128>}, {transform_indices = @transform_7, window_bounds = array<i64: 1, 3, 128>}, {transform_indices = @transform_8, window_bounds = array<i64: 1, 2, 128>}, {transform_indices = @transform_9, window_bounds = array<i64: 1, 1, 4, 2>}, {transform_indices = @transform_10, window_bounds = array<i64: 1, 1, 3, 2>}, {transform_indices = @transform_11, window_bounds = array<i64: 1, 1, 3, 2>}, {transform_indices = @transform_12, window_bounds = array<i64: 1, 1, 2, 2>}]} {
    %0 = tpu.iota {dimensions = array<i32: 1>} : vector<1x128xi32>
    %c128_i32 = arith.constant 128 : i32
    %1 = arith.muli %arg1, %c128_i32 : i32
    %2 = vector.broadcast %1 : i32 to vector<1x128xi32>
    %3 = arith.addi %2, %0 : vector<1x128xi32>
    %c0 = arith.constant 0 : index
    %c0_0 = arith.constant 0 : index
    %c0_1 = arith.constant 0 : index
    %4 = vector.load %arg3[%c0, %c0_0, %c0_1] : memref<1x4x128xf32, #tpu.memory_space<vmem>>, vector<1x4x128xf32>
    %5 = vector.shape_cast %4 : vector<1x4x128xf32> to vector<4x128xf32>
    %c0_2 = arith.constant 0 : index
    %c0_3 = arith.constant 0 : index
    %c0_4 = arith.constant 0 : index
    %6 = vector.load %arg2[%c0_2, %c0_3, %c0_4] : memref<1x4x128xf32, #tpu.memory_space<vmem>>, vector<1x4x128xf32>
    %7 = vector.shape_cast %6 : vector<1x4x128xf32> to vector<4x128xf32>
    %c0_5 = arith.constant 0 : index
    %c0_6 = arith.constant 0 : index
    %c0_7 = arith.constant 0 : index
    %8 = vector.load %arg4[%c0_5, %c0_6, %c0_7] : memref<1x4x128xf32, #tpu.memory_space<vmem>>, vector<1x4x128xf32>
    %9 = vector.shape_cast %8 : vector<1x4x128xf32> to vector<4x128xf32>
    %10 = arith.truncf %5 : vector<4x128xf32> to vector<4x128xbf16>
    %c0_8 = arith.constant 0 : index
    %c0_9 = arith.constant 0 : index
    %11 = vector.load %arg5[%c0_8, %c0_9] : memref<10x4xbf16, #tpu.memory_space<vmem>>, vector<10x4xbf16>
    %cst = arith.constant dense<0.000000e+00> : vector<10x128xf32>
    %12 = tpu.matmul %11, %10, %cst {dimension_numbers = #tpu.dot_dimension_numbers<[1], [0], [0], [1], [0, 0, 1, 1], [], []>} : vector<10x4xbf16>, vector<4x128xbf16>, vector<10x128xf32> -> vector<10x128xf32>
    %13 = vector.extract_strided_slice %12 {offsets = [0, 0], sizes = [4, 128], strides = [1, 1]} : vector<10x128xf32> to vector<4x128xf32>
    %14 = vector.extract_strided_slice %12 {offsets = [4, 0], sizes = [3, 128], strides = [1, 1]} : vector<10x128xf32> to vector<3x128xf32>
    %15 = vector.extract_strided_slice %12 {offsets = [7, 0], sizes = [3, 128], strides = [1, 1]} : vector<10x128xf32> to vector<3x128xf32>
    %c1_i32 = arith.constant 1 : i32
    %16 = tpu.dynamic_rotate %5 by %c1_i32 dim 1 : vector<4x128xf32>, i32 -> vector<4x128xf32>
    %c1_i32_10 = arith.constant 1 : i32
    %17 = tpu.dynamic_rotate %7 by %c1_i32_10 dim 1 : vector<4x128xf32>, i32 -> vector<4x128xf32>
    %c1_i32_11 = arith.constant 1 : i32
    %18 = vector.broadcast %c1_i32_11 : i32 to vector<1x128xi32>
    %19 = arith.cmpi sge, %0, %18 : vector<1x128xi32>
    %20 = vector.shape_cast %19 : vector<1x128xi1> to vector<1x128xi1>
    %21 = vector.broadcast %20 : vector<1x128xi1> to vector<4x128xi1>
    %22 = arith.select %21, %16, %17 : vector<4x128xi1>, vector<4x128xf32>
    %c1_i32_12 = arith.constant 1 : i32
    %23 = vector.broadcast %c1_i32_12 : i32 to vector<1x128xi32>
    %24 = arith.cmpi sge, %3, %23 : vector<1x128xi32>
    %25 = vector.shape_cast %24 : vector<1x128xi1> to vector<1x128xi1>
    %26 = vector.broadcast %25 : vector<1x128xi1> to vector<4x128xi1>
    %27 = arith.select %26, %22, %5 : vector<4x128xi1>, vector<4x128xf32>
    %c127_i32 = arith.constant 127 : i32
    %28 = tpu.dynamic_rotate %5 by %c127_i32 dim 1 : vector<4x128xf32>, i32 -> vector<4x128xf32>
    %c127_i32_13 = arith.constant 127 : i32
    %29 = tpu.dynamic_rotate %9 by %c127_i32_13 dim 1 : vector<4x128xf32>, i32 -> vector<4x128xf32>
    %c127_i32_14 = arith.constant 127 : i32
    %30 = vector.broadcast %c127_i32_14 : i32 to vector<1x128xi32>
    %31 = arith.cmpi slt, %0, %30 : vector<1x128xi32>
    %32 = vector.shape_cast %31 : vector<1x128xi1> to vector<1x128xi1>
    %33 = vector.broadcast %32 : vector<1x128xi1> to vector<4x128xi1>
    %34 = arith.select %33, %28, %29 : vector<4x128xi1>, vector<4x128xf32>
    %c511_i32 = arith.constant 511 : i32
    %35 = vector.broadcast %c511_i32 : i32 to vector<1x128xi32>
    %36 = arith.cmpi slt, %3, %35 : vector<1x128xi32>
    %37 = vector.shape_cast %36 : vector<1x128xi1> to vector<1x128xi1>
    %38 = vector.broadcast %37 : vector<1x128xi1> to vector<4x128xi1>
    %39 = arith.select %38, %34, %5 : vector<4x128xi1>, vector<4x128xf32>
    %40 = arith.maximumf %27, %5 : vector<4x128xf32>
    %41 = arith.maximumf %40, %39 : vector<4x128xf32>
    %c0_15 = arith.constant 0 : index
    %c0_16 = arith.constant 0 : index
    %42 = vector.load %arg6[%c0_15, %c0_16] : memref<2x4xbf16, #tpu.memory_space<vmem>>, vector<2x4xbf16>
    %43 = arith.truncf %41 : vector<4x128xf32> to vector<4x128xbf16>
    %cst_17 = arith.constant dense<0.000000e+00> : vector<2x128xf32>
    %44 = tpu.matmul %42, %43, %cst_17 {dimension_numbers = #tpu.dot_dimension_numbers<[1], [0], [0], [1], [0, 0, 1, 1], [], []>} : vector<2x4xbf16>, vector<4x128xbf16>, vector<2x128xf32> -> vector<2x128xf32>
    %c0_18 = arith.constant 0 : index
    %c0_19 = arith.constant 0 : index
    %c0_20 = arith.constant 0 : index
    %45 = vector.load %arg7[%c0_18, %c0_19, %c0_20] : memref<1x4x128xf32, #tpu.memory_space<vmem>>, vector<1x4x128xf32>
    %46 = vector.shape_cast %45 : vector<1x4x128xf32> to vector<4x128xf32>
    %47 = vector.shape_cast %13 : vector<4x128xf32> to vector<1x4x128xf32>
    tpu.vector_store %arg7[%c0_18, %c0_19, %c0_20], %47 {strides = array<i32>} : memref<1x4x128xf32, #tpu.memory_space<vmem>>, vector<1x4x128xf32>,
    %c0_21 = arith.constant 0 : index
    %c0_22 = arith.constant 0 : index
    %c0_23 = arith.constant 0 : index
    %48 = vector.load %arg8[%c0_21, %c0_22, %c0_23] : memref<1x3x128xf32, #tpu.memory_space<vmem>>, vector<1x3x128xf32>
    %49 = vector.shape_cast %48 : vector<1x3x128xf32> to vector<3x128xf32>
    %50 = vector.shape_cast %14 : vector<3x128xf32> to vector<1x3x128xf32>
    tpu.vector_store %arg8[%c0_21, %c0_22, %c0_23], %50 {strides = array<i32>} : memref<1x3x128xf32, #tpu.memory_space<vmem>>, vector<1x3x128xf32>,
    %c0_24 = arith.constant 0 : index
    %c0_25 = arith.constant 0 : index
    %c0_26 = arith.constant 0 : index
    %51 = vector.load %arg9[%c0_24, %c0_25, %c0_26] : memref<1x3x128xf32, #tpu.memory_space<vmem>>, vector<1x3x128xf32>
    %52 = vector.shape_cast %51 : vector<1x3x128xf32> to vector<3x128xf32>
    %53 = vector.shape_cast %15 : vector<3x128xf32> to vector<1x3x128xf32>
    tpu.vector_store %arg9[%c0_24, %c0_25, %c0_26], %53 {strides = array<i32>} : memref<1x3x128xf32, #tpu.memory_space<vmem>>, vector<1x3x128xf32>,
    %c0_27 = arith.constant 0 : index
    %c0_28 = arith.constant 0 : index
    %c0_29 = arith.constant 0 : index
    %54 = vector.load %arg10[%c0_27, %c0_28, %c0_29] : memref<1x2x128xf32, #tpu.memory_space<vmem>>, vector<1x2x128xf32>
    %55 = vector.shape_cast %54 : vector<1x2x128xf32> to vector<2x128xf32>
    %56 = vector.shape_cast %44 : vector<2x128xf32> to vector<1x2x128xf32>
    tpu.vector_store %arg10[%c0_27, %c0_28, %c0_29], %56 {strides = array<i32>} : memref<1x2x128xf32, #tpu.memory_space<vmem>>, vector<1x2x128xf32>,
    %cst_30 = arith.constant dense<0.000000e+00> : vector<4xf32>
    %57 = vector.multi_reduction <add>, %13, %cst_30 [1] : vector<4x128xf32> to vector<4xf32>
    %58 = vector.shape_cast %57 : vector<4xf32> to vector<4x1xf32>
    %59 = arith.mulf %13, %13 : vector<4x128xf32>
    %cst_31 = arith.constant dense<0.000000e+00> : vector<4xf32>
    %60 = vector.multi_reduction <add>, %59, %cst_31 [1] : vector<4x128xf32> to vector<4xf32>
    %61 = vector.shape_cast %60 : vector<4xf32> to vector<4x1xf32>
    %62 = tpu.concatenate %58, %61 in 1 : vector<4x1xf32>, vector<4x1xf32> -> vector<4x2xf32>
    %c0_32 = arith.constant 0 : index
    %c0_33 = arith.constant 0 : index
    %c0_34 = arith.constant 0 : index
    %c0_35 = arith.constant 0 : index
    %63 = vector.load %arg11[%c0_32, %c0_33, %c0_34, %c0_35] : memref<1x1x4x2xf32, #tpu.memory_space<vmem>>, vector<1x1x4x2xf32>
    %64 = vector.shape_cast %63 : vector<1x1x4x2xf32> to vector<4x2xf32>
    %65 = vector.shape_cast %62 : vector<4x2xf32> to vector<1x1x4x2xf32>
    tpu.vector_store %arg11[%c0_32, %c0_33, %c0_34, %c0_35], %65 {strides = array<i32>} : memref<1x1x4x2xf32, #tpu.memory_space<vmem>>, vector<1x1x4x2xf32>,
    %cst_36 = arith.constant dense<0.000000e+00> : vector<3xf32>
    %66 = vector.multi_reduction <add>, %14, %cst_36 [1] : vector<3x128xf32> to vector<3xf32>
    %67 = vector.shape_cast %66 : vector<3xf32> to vector<3x1xf32>
    %68 = arith.mulf %14, %14 : vector<3x128xf32>
    %cst_37 = arith.constant dense<0.000000e+00> : vector<3xf32>
    %69 = vector.multi_reduction <add>, %68, %cst_37 [1] : vector<3x128xf32> to vector<3xf32>
    %70 = vector.shape_cast %69 : vector<3xf32> to vector<3x1xf32>
    %71 = tpu.concatenate %67, %70 in 1 : vector<3x1xf32>, vector<3x1xf32> -> vector<3x2xf32>
    %c0_38 = arith.constant 0 : index
    %c0_39 = arith.constant 0 : index
    %c0_40 = arith.constant 0 : index
    %c0_41 = arith.constant 0 : index
    %72 = vector.load %arg12[%c0_38, %c0_39, %c0_40, %c0_41] : memref<1x1x3x2xf32, #tpu.memory_space<vmem>>, vector<1x1x3x2xf32>
    %73 = vector.shape_cast %72 : vector<1x1x3x2xf32> to vector<3x2xf32>
    %74 = vector.shape_cast %71 : vector<3x2xf32> to vector<1x1x3x2xf32>
    tpu.vector_store %arg12[%c0_38, %c0_39, %c0_40, %c0_41], %74 {strides = array<i32>} : memref<1x1x3x2xf32, #tpu.memory_space<vmem>>, vector<1x1x3x2xf32>,
    %cst_42 = arith.constant dense<0.000000e+00> : vector<3xf32>
    %75 = vector.multi_reduction <add>, %15, %cst_42 [1] : vector<3x128xf32> to vector<3xf32>
    %76 = vector.shape_cast %75 : vector<3xf32> to vector<3x1xf32>
    %77 = arith.mulf %15, %15 : vector<3x128xf32>
    %cst_43 = arith.constant dense<0.000000e+00> : vector<3xf32>
    %78 = vector.multi_reduction <add>, %77, %cst_43 [1] : vector<3x128xf32> to vector<3xf32>
    %79 = vector.shape_cast %78 : vector<3xf32> to vector<3x1xf32>
    %80 = tpu.concatenate %76, %79 in 1 : vector<3x1xf32>, vector<3x1xf32> -> vector<3x2xf32>
    %c0_44 = arith.constant 0 : index
    %c0_45 = arith.constant 0 : index
    %c0_46 = arith.constant 0 : index
    %c0_47 = arith.constant 0 : index
    %81 = vector.load %arg13[%c0_44, %c0_45, %c0_46, %c0_47] : memref<1x1x3x2xf32, #tpu.memory_space<vmem>>, vector<1x1x3x2xf32>
    %82 = vector.shape_cast %81 : vector<1x1x3x2xf32> to vector<3x2xf32>
    %83 = vector.shape_cast %80 : vector<3x2xf32> to vector<1x1x3x2xf32>
    tpu.vector_store %arg13[%c0_44, %c0_45, %c0_46, %c0_47], %83 {strides = array<i32>} : memref<1x1x3x2xf32, #tpu.memory_space<vmem>>, vector<1x1x3x2xf32>,
    %cst_48 = arith.constant dense<0.000000e+00> : vector<2xf32>
    %84 = vector.multi_reduction <add>, %44, %cst_48 [1] : vector<2x128xf32> to vector<2xf32>
    %85 = vector.shape_cast %84 : vector<2xf32> to vector<2x1xf32>
    %86 = arith.mulf %44, %44 : vector<2x128xf32>
    %cst_49 = arith.constant dense<0.000000e+00> : vector<2xf32>
    %87 = vector.multi_reduction <add>, %86, %cst_49 [1] : vector<2x128xf32> to vector<2xf32>
    %88 = vector.shape_cast %87 : vector<2xf32> to vector<2x1xf32>
    %89 = tpu.concatenate %85, %88 in 1 : vector<2x1xf32>, vector<2x1xf32> -> vector<2x2xf32>
    %c0_50 = arith.constant 0 : index
    %c0_51 = arith.constant 0 : index
    %c0_52 = arith.constant 0 : index
    %c0_53 = arith.constant 0 : index
    %90 = vector.load %arg14[%c0_50, %c0_51, %c0_52, %c0_53] : memref<1x1x2x2xf32, #tpu.memory_space<vmem>>, vector<1x1x2x2xf32>
    %91 = vector.shape_cast %90 : vector<1x1x2x2xf32> to vector<2x2xf32>
    %92 = vector.shape_cast %89 : vector<2x2xf32> to vector<1x1x2x2xf32>
    tpu.vector_store %arg14[%c0_50, %c0_51, %c0_52, %c0_53], %92 {strides = array<i32>} : memref<1x1x2x2xf32, #tpu.memory_space<vmem>>, vector<1x1x2x2xf32>,
    return
  }
  func.func @transform_0(%arg0: i32, %arg1: i32) -> (i32, i32, i32) {
    %c1_i32 = arith.constant 1 : i32
    %0 = arith.subi %arg1, %c1_i32 : i32
    %c0_i32 = arith.constant 0 : i32
    %1 = arith.maxsi %0, %c0_i32 : i32
    %c0_i32_0 = arith.constant 0 : i32
    %c0_i32_1 = arith.constant 0 : i32
    return %arg0, %c0_i32_0, %1 : i32, i32, i32
  }
  func.func @transform_1(%arg0: i32, %arg1: i32) -> (i32, i32, i32) {
    %c0_i32 = arith.constant 0 : i32
    %c0_i32_0 = arith.constant 0 : i32
    return %arg0, %c0_i32, %arg1 : i32, i32, i32
  }
  func.func @transform_2(%arg0: i32, %arg1: i32) -> (i32, i32, i32) {
    %c1_i32 = arith.constant 1 : i32
    %0 = arith.addi %arg1, %c1_i32 : i32
    %c3_i32 = arith.constant 3 : i32
    %1 = arith.minsi %0, %c3_i32 : i32
    %c0_i32 = arith.constant 0 : i32
    %c0_i32_0 = arith.constant 0 : i32
    return %arg0, %c0_i32, %1 : i32, i32, i32
  }
  func.func @transform_3(%arg0: i32, %arg1: i32) -> (i32, i32) {
    %c0_i32 = arith.constant 0 : i32
    %c0_i32_0 = arith.constant 0 : i32
    %c0_i32_1 = arith.constant 0 : i32
    return %c0_i32, %c0_i32_0 : i32, i32
  }
  func.func @transform_4(%arg0: i32, %arg1: i32) -> (i32, i32) {
    %c0_i32 = arith.constant 0 : i32
    %c0_i32_0 = arith.constant 0 : i32
    %c0_i32_1 = arith.constant 0 : i32
    return %c0_i32, %c0_i32_0 : i32, i32
  }
  func.func @transform_5(%arg0: i32, %arg1: i32) -> (i32, i32, i32) {
    %c0_i32 = arith.constant 0 : i32
    %c0_i32_0 = arith.constant 0 : i32
    return %arg0, %c0_i32, %arg1 : i32, i32, i32
  }
  func.func @transform_6(%arg0: i32, %arg1: i32) -> (i32, i32, i32) {
    %c0_i32 = arith.constant 0 : i32
    %c0_i32_0 = arith.constant 0 : i32
    return %arg0, %c0_i32, %arg1 : i32, i32, i32
  }
  func.func @transform_7(%arg0: i32, %arg1: i32) -> (i32, i32, i32) {
    %c0_i32 = arith.constant 0 : i32
    %c0_i32_0 = arith.constant 0 : i32
    return %arg0, %c0_i32, %arg1 : i32, i32, i32
  }
  func.func @transform_8(%arg0: i32, %arg1: i32) -> (i32, i32, i32) {
    %c0_i32 = arith.constant 0 : i32
    %c0_i32_0 = arith.constant 0 : i32
    return %arg0, %c0_i32, %arg1 : i32, i32, i32
  }
  func.func @transform_9(%arg0: i32, %arg1: i32) -> (i32, i32, i32, i32) {
    %c0_i32 = arith.constant 0 : i32
    %c0_i32_0 = arith.constant 0 : i32
    %c0_i32_1 = arith.constant 0 : i32
    return %arg0, %arg1, %c0_i32, %c0_i32_0 : i32, i32, i32, i32
  }
  func.func @transform_10(%arg0: i32, %arg1: i32) -> (i32, i32, i32, i32) {
    %c0_i32 = arith.constant 0 : i32
    %c0_i32_0 = arith.constant 0 : i32
    %c0_i32_1 = arith.constant 0 : i32
    return %arg0, %arg1, %c0_i32, %c0_i32_0 : i32, i32, i32, i32
  }
  func.func @transform_11(%arg0: i32, %arg1: i32) -> (i32, i32, i32, i32) {
    %c0_i32 = arith.constant 0 : i32
    %c0_i32_0 = arith.constant 0 : i32
    %c0_i32_1 = arith.constant 0 : i32
    return %arg0, %arg1, %c0_i32, %c0_i32_0 : i32, i32, i32, i32
  }
  func.func @transform_12(%arg0: i32, %arg1: i32) -> (i32, i32, i32, i32) {
    %c0_i32 = arith.constant 0 : i32
    %c0_i32_0 = arith.constant 0 : i32
    %c0_i32_1 = arith.constant 0 : i32
    return %arg0, %arg1, %c0_i32, %c0_i32_0 : i32, i32, i32, i32
  }
}

module attributes {stable_mosaic.version = 11 : i64} {
  func.func @_stage2_kernel(%arg0: i32, %arg1: i32, %arg2: memref<1x3x128xf32, #tpu.memory_space<vmem>>, %arg3: memref<1x3x128xf32, #tpu.memory_space<vmem>>, %arg4: memref<1x3x128xf32, #tpu.memory_space<vmem>>, %arg5: memref<1x3x128xf32, #tpu.memory_space<vmem>>, %arg6: memref<1x3x128xf32, #tpu.memory_space<vmem>>, %arg7: memref<1x3x128xf32, #tpu.memory_space<vmem>>, %arg8: memref<3x1xf32, #tpu.memory_space<vmem>>, %arg9: memref<3x1xf32, #tpu.memory_space<vmem>>, %arg10: memref<3x1xf32, #tpu.memory_space<vmem>>, %arg11: memref<3x1xf32, #tpu.memory_space<vmem>>, %arg12: memref<3x6x3xbf16, #tpu.memory_space<vmem>>, %arg13: memref<5x5x3xbf16, #tpu.memory_space<vmem>>, %arg14: memref<1x6x128xf32, #tpu.memory_space<vmem>>, %arg15: memref<1x5x128xf32, #tpu.memory_space<vmem>>, %arg16: memref<1x1x6x2xf32, #tpu.memory_space<vmem>>, %arg17: memref<1x1x5x2xf32, #tpu.memory_space<vmem>>) attributes {dimension_semantics = [#tpu.dimension_semantics<parallel>, #tpu.dimension_semantics<parallel>], iteration_bounds = array<i64: 2, 4>, scalar_prefetch = 0 : i64, scratch_operands = 0 : i64, tpu.core_type = #tpu.core_type<tc>, window_params = [{transform_indices = @transform_0, window_bounds = array<i64: 1, 3, 128>}, {transform_indices = @transform_1, window_bounds = array<i64: 1, 3, 128>}, {transform_indices = @transform_2, window_bounds = array<i64: 1, 3, 128>}, {transform_indices = @transform_3, window_bounds = array<i64: 1, 3, 128>}, {transform_indices = @transform_4, window_bounds = array<i64: 1, 3, 128>}, {transform_indices = @transform_5, window_bounds = array<i64: 1, 3, 128>}, {pipeline_mode = #tpu.pipeline_mode<synchronous>, transform_indices = @transform_6, window_bounds = array<i64: 3, 1>}, {pipeline_mode = #tpu.pipeline_mode<synchronous>, transform_indices = @transform_7, window_bounds = array<i64: 3, 1>}, {pipeline_mode = #tpu.pipeline_mode<synchronous>, transform_indices = @transform_8, window_bounds = array<i64: 3, 1>}, {pipeline_mode = #tpu.pipeline_mode<synchronous>, transform_indices = @transform_9, window_bounds = array<i64: 3, 1>}, {pipeline_mode = #tpu.pipeline_mode<synchronous>, transform_indices = @transform_10, window_bounds = array<i64: 3, 6, 3>}, {pipeline_mode = #tpu.pipeline_mode<synchronous>, transform_indices = @transform_11, window_bounds = array<i64: 5, 5, 3>}, {transform_indices = @transform_12, window_bounds = array<i64: 1, 6, 128>}, {transform_indices = @transform_13, window_bounds = array<i64: 1, 5, 128>}, {transform_indices = @transform_14, window_bounds = array<i64: 1, 1, 6, 2>}, {transform_indices = @transform_15, window_bounds = array<i64: 1, 1, 5, 2>}]} {
    %0 = tpu.iota {dimensions = array<i32: 1>} : vector<1x128xi32>
    %c128_i32 = arith.constant 128 : i32
    %1 = arith.muli %arg1, %c128_i32 : i32
    %2 = vector.broadcast %1 : i32 to vector<1x128xi32>
    %3 = arith.addi %2, %0 : vector<1x128xi32>
    %c0 = arith.constant 0 : index
    %c0_0 = arith.constant 0 : index
    %4 = vector.load %arg8[%c0, %c0_0] : memref<3x1xf32, #tpu.memory_space<vmem>>, vector<3x1xf32>
    %c0_1 = arith.constant 0 : index
    %c0_2 = arith.constant 0 : index
    %5 = vector.load %arg9[%c0_1, %c0_2] : memref<3x1xf32, #tpu.memory_space<vmem>>, vector<3x1xf32>
    %c0_3 = arith.constant 0 : index
    %c0_4 = arith.constant 0 : index
    %c0_5 = arith.constant 0 : index
    %6 = vector.load %arg2[%c0_3, %c0_4, %c0_5] : memref<1x3x128xf32, #tpu.memory_space<vmem>>, vector<1x3x128xf32>
    %7 = vector.shape_cast %6 : vector<1x3x128xf32> to vector<3x128xf32>
    %8 = vector.broadcast %4 : vector<3x1xf32> to vector<3x128xf32>
    %9 = arith.mulf %7, %8 : vector<3x128xf32>
    %10 = vector.broadcast %5 : vector<3x1xf32> to vector<3x128xf32>
    %11 = arith.addf %9, %10 : vector<3x128xf32>
    %cst = arith.constant 0.000000e+00 : f32
    %12 = vector.broadcast %cst : f32 to vector<3x128xf32>
    %13 = arith.maximumf %11, %12 : vector<3x128xf32>
    %c0_6 = arith.constant 0 : index
    %c0_7 = arith.constant 0 : index
    %c0_8 = arith.constant 0 : index
    %14 = vector.load %arg3[%c0_6, %c0_7, %c0_8] : memref<1x3x128xf32, #tpu.memory_space<vmem>>, vector<1x3x128xf32>
    %15 = vector.shape_cast %14 : vector<1x3x128xf32> to vector<3x128xf32>
    %16 = vector.broadcast %4 : vector<3x1xf32> to vector<3x128xf32>
    %17 = arith.mulf %15, %16 : vector<3x128xf32>
    %18 = vector.broadcast %5 : vector<3x1xf32> to vector<3x128xf32>
    %19 = arith.addf %17, %18 : vector<3x128xf32>
    %cst_9 = arith.constant 0.000000e+00 : f32
    %20 = vector.broadcast %cst_9 : f32 to vector<3x128xf32>
    %21 = arith.maximumf %19, %20 : vector<3x128xf32>
    %c0_10 = arith.constant 0 : index
    %c0_11 = arith.constant 0 : index
    %c0_12 = arith.constant 0 : index
    %22 = vector.load %arg4[%c0_10, %c0_11, %c0_12] : memref<1x3x128xf32, #tpu.memory_space<vmem>>, vector<1x3x128xf32>
    %23 = vector.shape_cast %22 : vector<1x3x128xf32> to vector<3x128xf32>
    %24 = vector.broadcast %4 : vector<3x1xf32> to vector<3x128xf32>
    %25 = arith.mulf %23, %24 : vector<3x128xf32>
    %26 = vector.broadcast %5 : vector<3x1xf32> to vector<3x128xf32>
    %27 = arith.addf %25, %26 : vector<3x128xf32>
    %cst_13 = arith.constant 0.000000e+00 : f32
    %28 = vector.broadcast %cst_13 : f32 to vector<3x128xf32>
    %29 = arith.maximumf %27, %28 : vector<3x128xf32>
    %cst_14 = arith.constant 0.000000e+00 : f32
    %30 = vector.broadcast %cst_14 : f32 to vector<6x128xf32>
    %c1_i32 = arith.constant 1 : i32
    %31 = tpu.dynamic_rotate %21 by %c1_i32 dim 1 : vector<3x128xf32>, i32 -> vector<3x128xf32>
    %c1_i32_15 = arith.constant 1 : i32
    %32 = tpu.dynamic_rotate %13 by %c1_i32_15 dim 1 : vector<3x128xf32>, i32 -> vector<3x128xf32>
    %c1_i32_16 = arith.constant 1 : i32
    %33 = vector.broadcast %c1_i32_16 : i32 to vector<1x128xi32>
    %34 = arith.cmpi sge, %0, %33 : vector<1x128xi32>
    %35 = vector.shape_cast %34 : vector<1x128xi1> to vector<1x128xi1>
    %36 = vector.broadcast %35 : vector<1x128xi1> to vector<3x128xi1>
    %37 = arith.select %36, %31, %32 : vector<3x128xi1>, vector<3x128xf32>
    %c1_i32_17 = arith.constant 1 : i32
    %38 = vector.broadcast %c1_i32_17 : i32 to vector<1x128xi32>
    %39 = arith.cmpi sge, %3, %38 : vector<1x128xi32>
    %cst_18 = arith.constant 0.000000e+00 : f32
    %40 = vector.shape_cast %39 : vector<1x128xi1> to vector<1x128xi1>
    %41 = vector.broadcast %40 : vector<1x128xi1> to vector<3x128xi1>
    %42 = vector.broadcast %cst_18 : f32 to vector<3x128xf32>
    %43 = arith.select %41, %37, %42 : vector<3x128xi1>, vector<3x128xf32>
    %c0_19 = arith.constant 0 : index
    %c0_20 = arith.constant 0 : index
    %c0_21 = arith.constant 0 : index
    %44 = vector.load %arg12[%c0_19, %c0_20, %c0_21] : memref<3x6x3xbf16, #tpu.memory_space<vmem>>, vector<1x6x3xbf16>
    %45 = vector.shape_cast %44 : vector<1x6x3xbf16> to vector<6x3xbf16>
    %46 = arith.truncf %43 : vector<3x128xf32> to vector<3x128xbf16>
    %cst_22 = arith.constant dense<0.000000e+00> : vector<6x128xf32>
    %47 = tpu.matmul %45, %46, %cst_22 {dimension_numbers = #tpu.dot_dimension_numbers<[1], [0], [0], [1], [0, 0, 1, 1], [], []>} : vector<6x3xbf16>, vector<3x128xbf16>, vector<6x128xf32> -> vector<6x128xf32>
    %48 = arith.addf %30, %47 : vector<6x128xf32>
    %c1 = arith.constant 1 : index
    %c0_23 = arith.constant 0 : index
    %c0_24 = arith.constant 0 : index
    %49 = vector.load %arg12[%c1, %c0_23, %c0_24] : memref<3x6x3xbf16, #tpu.memory_space<vmem>>, vector<1x6x3xbf16>
    %50 = vector.shape_cast %49 : vector<1x6x3xbf16> to vector<6x3xbf16>
    %51 = arith.truncf %21 : vector<3x128xf32> to vector<3x128xbf16>
    %cst_25 = arith.constant dense<0.000000e+00> : vector<6x128xf32>
    %52 = tpu.matmul %50, %51, %cst_25 {dimension_numbers = #tpu.dot_dimension_numbers<[1], [0], [0], [1], [0, 0, 1, 1], [], []>} : vector<6x3xbf16>, vector<3x128xbf16>, vector<6x128xf32> -> vector<6x128xf32>
    %53 = arith.addf %48, %52 : vector<6x128xf32>
    %c127_i32 = arith.constant 127 : i32
    %54 = tpu.dynamic_rotate %21 by %c127_i32 dim 1 : vector<3x128xf32>, i32 -> vector<3x128xf32>
    %c127_i32_26 = arith.constant 127 : i32
    %55 = tpu.dynamic_rotate %29 by %c127_i32_26 dim 1 : vector<3x128xf32>, i32 -> vector<3x128xf32>
    %c127_i32_27 = arith.constant 127 : i32
    %56 = vector.broadcast %c127_i32_27 : i32 to vector<1x128xi32>
    %57 = arith.cmpi slt, %0, %56 : vector<1x128xi32>
    %58 = vector.shape_cast %57 : vector<1x128xi1> to vector<1x128xi1>
    %59 = vector.broadcast %58 : vector<1x128xi1> to vector<3x128xi1>
    %60 = arith.select %59, %54, %55 : vector<3x128xi1>, vector<3x128xf32>
    %c511_i32 = arith.constant 511 : i32
    %61 = vector.broadcast %c511_i32 : i32 to vector<1x128xi32>
    %62 = arith.cmpi slt, %3, %61 : vector<1x128xi32>
    %cst_28 = arith.constant 0.000000e+00 : f32
    %63 = vector.shape_cast %62 : vector<1x128xi1> to vector<1x128xi1>
    %64 = vector.broadcast %63 : vector<1x128xi1> to vector<3x128xi1>
    %65 = vector.broadcast %cst_28 : f32 to vector<3x128xf32>
    %66 = arith.select %64, %60, %65 : vector<3x128xi1>, vector<3x128xf32>
    %c2 = arith.constant 2 : index
    %c0_29 = arith.constant 0 : index
    %c0_30 = arith.constant 0 : index
    %67 = vector.load %arg12[%c2, %c0_29, %c0_30] : memref<3x6x3xbf16, #tpu.memory_space<vmem>>, vector<1x6x3xbf16>
    %68 = vector.shape_cast %67 : vector<1x6x3xbf16> to vector<6x3xbf16>
    %69 = arith.truncf %66 : vector<3x128xf32> to vector<3x128xbf16>
    %cst_31 = arith.constant dense<0.000000e+00> : vector<6x128xf32>
    %70 = tpu.matmul %68, %69, %cst_31 {dimension_numbers = #tpu.dot_dimension_numbers<[1], [0], [0], [1], [0, 0, 1, 1], [], []>} : vector<6x3xbf16>, vector<3x128xbf16>, vector<6x128xf32> -> vector<6x128xf32>
    %71 = arith.addf %53, %70 : vector<6x128xf32>
    %c0_32 = arith.constant 0 : index
    %c0_33 = arith.constant 0 : index
    %72 = vector.load %arg10[%c0_32, %c0_33] : memref<3x1xf32, #tpu.memory_space<vmem>>, vector<3x1xf32>
    %c0_34 = arith.constant 0 : index
    %c0_35 = arith.constant 0 : index
    %73 = vector.load %arg11[%c0_34, %c0_35] : memref<3x1xf32, #tpu.memory_space<vmem>>, vector<3x1xf32>
    %c0_36 = arith.constant 0 : index
    %c0_37 = arith.constant 0 : index
    %c0_38 = arith.constant 0 : index
    %74 = vector.load %arg5[%c0_36, %c0_37, %c0_38] : memref<1x3x128xf32, #tpu.memory_space<vmem>>, vector<1x3x128xf32>
    %75 = vector.shape_cast %74 : vector<1x3x128xf32> to vector<3x128xf32>
    %76 = vector.broadcast %72 : vector<3x1xf32> to vector<3x128xf32>
    %77 = arith.mulf %75, %76 : vector<3x128xf32>
    %78 = vector.broadcast %73 : vector<3x1xf32> to vector<3x128xf32>
    %79 = arith.addf %77, %78 : vector<3x128xf32>
    %cst_39 = arith.constant 0.000000e+00 : f32
    %80 = vector.broadcast %cst_39 : f32 to vector<3x128xf32>
    %81 = arith.maximumf %79, %80 : vector<3x128xf32>
    %c0_40 = arith.constant 0 : index
    %c0_41 = arith.constant 0 : index
    %c0_42 = arith.constant 0 : index
    %82 = vector.load %arg6[%c0_40, %c0_41, %c0_42] : memref<1x3x128xf32, #tpu.memory_space<vmem>>, vector<1x3x128xf32>
    %83 = vector.shape_cast %82 : vector<1x3x128xf32> to vector<3x128xf32>
    %84 = vector.broadcast %72 : vector<3x1xf32> to vector<3x128xf32>
    %85 = arith.mulf %83, %84 : vector<3x128xf32>
    %86 = vector.broadcast %73 : vector<3x1xf32> to vector<3x128xf32>
    %87 = arith.addf %85, %86 : vector<3x128xf32>
    %cst_43 = arith.constant 0.000000e+00 : f32
    %88 = vector.broadcast %cst_43 : f32 to vector<3x128xf32>
    %89 = arith.maximumf %87, %88 : vector<3x128xf32>
    %c0_44 = arith.constant 0 : index
    %c0_45 = arith.constant 0 : index
    %c0_46 = arith.constant 0 : index
    %90 = vector.load %arg7[%c0_44, %c0_45, %c0_46] : memref<1x3x128xf32, #tpu.memory_space<vmem>>, vector<1x3x128xf32>
    %91 = vector.shape_cast %90 : vector<1x3x128xf32> to vector<3x128xf32>
    %92 = vector.broadcast %72 : vector<3x1xf32> to vector<3x128xf32>
    %93 = arith.mulf %91, %92 : vector<3x128xf32>
    %94 = vector.broadcast %73 : vector<3x1xf32> to vector<3x128xf32>
    %95 = arith.addf %93, %94 : vector<3x128xf32>
    %cst_47 = arith.constant 0.000000e+00 : f32
    %96 = vector.broadcast %cst_47 : f32 to vector<3x128xf32>
    %97 = arith.maximumf %95, %96 : vector<3x128xf32>
    %cst_48 = arith.constant 0.000000e+00 : f32
    %98 = vector.broadcast %cst_48 : f32 to vector<5x128xf32>
    %c2_i32 = arith.constant 2 : i32
    %99 = tpu.dynamic_rotate %89 by %c2_i32 dim 1 : vector<3x128xf32>, i32 -> vector<3x128xf32>
    %c2_i32_49 = arith.constant 2 : i32
    %100 = tpu.dynamic_rotate %81 by %c2_i32_49 dim 1 : vector<3x128xf32>, i32 -> vector<3x128xf32>
    %c2_i32_50 = arith.constant 2 : i32
    %101 = vector.broadcast %c2_i32_50 : i32 to vector<1x128xi32>
    %102 = arith.cmpi sge, %0, %101 : vector<1x128xi32>
    %103 = vector.shape_cast %102 : vector<1x128xi1> to vector<1x128xi1>
    %104 = vector.broadcast %103 : vector<1x128xi1> to vector<3x128xi1>
    %105 = arith.select %104, %99, %100 : vector<3x128xi1>, vector<3x128xf32>
    %c2_i32_51 = arith.constant 2 : i32
    %106 = vector.broadcast %c2_i32_51 : i32 to vector<1x128xi32>
    %107 = arith.cmpi sge, %3, %106 : vector<1x128xi32>
    %cst_52 = arith.constant 0.000000e+00 : f32
    %108 = vector.shape_cast %107 : vector<1x128xi1> to vector<1x128xi1>
    %109 = vector.broadcast %108 : vector<1x128xi1> to vector<3x128xi1>
    %110 = vector.broadcast %cst_52 : f32 to vector<3x128xf32>
    %111 = arith.select %109, %105, %110 : vector<3x128xi1>, vector<3x128xf32>
    %c0_53 = arith.constant 0 : index
    %c0_54 = arith.constant 0 : index
    %c0_55 = arith.constant 0 : index
    %112 = vector.load %arg13[%c0_53, %c0_54, %c0_55] : memref<5x5x3xbf16, #tpu.memory_space<vmem>>, vector<1x5x3xbf16>
    %113 = vector.shape_cast %112 : vector<1x5x3xbf16> to vector<5x3xbf16>
    %114 = arith.truncf %111 : vector<3x128xf32> to vector<3x128xbf16>
    %cst_56 = arith.constant dense<0.000000e+00> : vector<5x128xf32>
    %115 = tpu.matmul %113, %114, %cst_56 {dimension_numbers = #tpu.dot_dimension_numbers<[1], [0], [0], [1], [0, 0, 1, 1], [], []>} : vector<5x3xbf16>, vector<3x128xbf16>, vector<5x128xf32> -> vector<5x128xf32>
    %116 = arith.addf %98, %115 : vector<5x128xf32>
    %c1_i32_57 = arith.constant 1 : i32
    %117 = tpu.dynamic_rotate %89 by %c1_i32_57 dim 1 : vector<3x128xf32>, i32 -> vector<3x128xf32>
    %c1_i32_58 = arith.constant 1 : i32
    %118 = tpu.dynamic_rotate %81 by %c1_i32_58 dim 1 : vector<3x128xf32>, i32 -> vector<3x128xf32>
    %c1_i32_59 = arith.constant 1 : i32
    %119 = vector.broadcast %c1_i32_59 : i32 to vector<1x128xi32>
    %120 = arith.cmpi sge, %0, %119 : vector<1x128xi32>
    %121 = vector.shape_cast %120 : vector<1x128xi1> to vector<1x128xi1>
    %122 = vector.broadcast %121 : vector<1x128xi1> to vector<3x128xi1>
    %123 = arith.select %122, %117, %118 : vector<3x128xi1>, vector<3x128xf32>
    %c1_i32_60 = arith.constant 1 : i32
    %124 = vector.broadcast %c1_i32_60 : i32 to vector<1x128xi32>
    %125 = arith.cmpi sge, %3, %124 : vector<1x128xi32>
    %cst_61 = arith.constant 0.000000e+00 : f32
    %126 = vector.shape_cast %125 : vector<1x128xi1> to vector<1x128xi1>
    %127 = vector.broadcast %126 : vector<1x128xi1> to vector<3x128xi1>
    %128 = vector.broadcast %cst_61 : f32 to vector<3x128xf32>
    %129 = arith.select %127, %123, %128 : vector<3x128xi1>, vector<3x128xf32>
    %c1_62 = arith.constant 1 : index
    %c0_63 = arith.constant 0 : index
    %c0_64 = arith.constant 0 : index
    %130 = vector.load %arg13[%c1_62, %c0_63, %c0_64] : memref<5x5x3xbf16, #tpu.memory_space<vmem>>, vector<1x5x3xbf16>
    %131 = vector.shape_cast %130 : vector<1x5x3xbf16> to vector<5x3xbf16>
    %132 = arith.truncf %129 : vector<3x128xf32> to vector<3x128xbf16>
    %cst_65 = arith.constant dense<0.000000e+00> : vector<5x128xf32>
    %133 = tpu.matmul %131, %132, %cst_65 {dimension_numbers = #tpu.dot_dimension_numbers<[1], [0], [0], [1], [0, 0, 1, 1], [], []>} : vector<5x3xbf16>, vector<3x128xbf16>, vector<5x128xf32> -> vector<5x128xf32>
    %134 = arith.addf %116, %133 : vector<5x128xf32>
    %c2_66 = arith.constant 2 : index
    %c0_67 = arith.constant 0 : index
    %c0_68 = arith.constant 0 : index
    %135 = vector.load %arg13[%c2_66, %c0_67, %c0_68] : memref<5x5x3xbf16, #tpu.memory_space<vmem>>, vector<1x5x3xbf16>
    %136 = vector.shape_cast %135 : vector<1x5x3xbf16> to vector<5x3xbf16>
    %137 = arith.truncf %89 : vector<3x128xf32> to vector<3x128xbf16>
    %cst_69 = arith.constant dense<0.000000e+00> : vector<5x128xf32>
    %138 = tpu.matmul %136, %137, %cst_69 {dimension_numbers = #tpu.dot_dimension_numbers<[1], [0], [0], [1], [0, 0, 1, 1], [], []>} : vector<5x3xbf16>, vector<3x128xbf16>, vector<5x128xf32> -> vector<5x128xf32>
    %139 = arith.addf %134, %138 : vector<5x128xf32>
    %c127_i32_70 = arith.constant 127 : i32
    %140 = tpu.dynamic_rotate %89 by %c127_i32_70 dim 1 : vector<3x128xf32>, i32 -> vector<3x128xf32>
    %c127_i32_71 = arith.constant 127 : i32
    %141 = tpu.dynamic_rotate %97 by %c127_i32_71 dim 1 : vector<3x128xf32>, i32 -> vector<3x128xf32>
    %c127_i32_72 = arith.constant 127 : i32
    %142 = vector.broadcast %c127_i32_72 : i32 to vector<1x128xi32>
    %143 = arith.cmpi slt, %0, %142 : vector<1x128xi32>
    %144 = vector.shape_cast %143 : vector<1x128xi1> to vector<1x128xi1>
    %145 = vector.broadcast %144 : vector<1x128xi1> to vector<3x128xi1>
    %146 = arith.select %145, %140, %141 : vector<3x128xi1>, vector<3x128xf32>
    %c511_i32_73 = arith.constant 511 : i32
    %147 = vector.broadcast %c511_i32_73 : i32 to vector<1x128xi32>
    %148 = arith.cmpi slt, %3, %147 : vector<1x128xi32>
    %cst_74 = arith.constant 0.000000e+00 : f32
    %149 = vector.shape_cast %148 : vector<1x128xi1> to vector<1x128xi1>
    %150 = vector.broadcast %149 : vector<1x128xi1> to vector<3x128xi1>
    %151 = vector.broadcast %cst_74 : f32 to vector<3x128xf32>
    %152 = arith.select %150, %146, %151 : vector<3x128xi1>, vector<3x128xf32>
    %c3 = arith.constant 3 : index
    %c0_75 = arith.constant 0 : index
    %c0_76 = arith.constant 0 : index
    %153 = vector.load %arg13[%c3, %c0_75, %c0_76] : memref<5x5x3xbf16, #tpu.memory_space<vmem>>, vector<1x5x3xbf16>
    %154 = vector.shape_cast %153 : vector<1x5x3xbf16> to vector<5x3xbf16>
    %155 = arith.truncf %152 : vector<3x128xf32> to vector<3x128xbf16>
    %cst_77 = arith.constant dense<0.000000e+00> : vector<5x128xf32>
    %156 = tpu.matmul %154, %155, %cst_77 {dimension_numbers = #tpu.dot_dimension_numbers<[1], [0], [0], [1], [0, 0, 1, 1], [], []>} : vector<5x3xbf16>, vector<3x128xbf16>, vector<5x128xf32> -> vector<5x128xf32>
    %157 = arith.addf %139, %156 : vector<5x128xf32>
    %c126_i32 = arith.constant 126 : i32
    %158 = tpu.dynamic_rotate %89 by %c126_i32 dim 1 : vector<3x128xf32>, i32 -> vector<3x128xf32>
    %c126_i32_78 = arith.constant 126 : i32
    %159 = tpu.dynamic_rotate %97 by %c126_i32_78 dim 1 : vector<3x128xf32>, i32 -> vector<3x128xf32>
    %c126_i32_79 = arith.constant 126 : i32
    %160 = vector.broadcast %c126_i32_79 : i32 to vector<1x128xi32>
    %161 = arith.cmpi slt, %0, %160 : vector<1x128xi32>
    %162 = vector.shape_cast %161 : vector<1x128xi1> to vector<1x128xi1>
    %163 = vector.broadcast %162 : vector<1x128xi1> to vector<3x128xi1>
    %164 = arith.select %163, %158, %159 : vector<3x128xi1>, vector<3x128xf32>
    %c510_i32 = arith.constant 510 : i32
    %165 = vector.broadcast %c510_i32 : i32 to vector<1x128xi32>
    %166 = arith.cmpi slt, %3, %165 : vector<1x128xi32>
    %cst_80 = arith.constant 0.000000e+00 : f32
    %167 = vector.shape_cast %166 : vector<1x128xi1> to vector<1x128xi1>
    %168 = vector.broadcast %167 : vector<1x128xi1> to vector<3x128xi1>
    %169 = vector.broadcast %cst_80 : f32 to vector<3x128xf32>
    %170 = arith.select %168, %164, %169 : vector<3x128xi1>, vector<3x128xf32>
    %c4 = arith.constant 4 : index
    %c0_81 = arith.constant 0 : index
    %c0_82 = arith.constant 0 : index
    %171 = vector.load %arg13[%c4, %c0_81, %c0_82] : memref<5x5x3xbf16, #tpu.memory_space<vmem>>, vector<1x5x3xbf16>
    %172 = vector.shape_cast %171 : vector<1x5x3xbf16> to vector<5x3xbf16>
    %173 = arith.truncf %170 : vector<3x128xf32> to vector<3x128xbf16>
    %cst_83 = arith.constant dense<0.000000e+00> : vector<5x128xf32>
    %174 = tpu.matmul %172, %173, %cst_83 {dimension_numbers = #tpu.dot_dimension_numbers<[1], [0], [0], [1], [0, 0, 1, 1], [], []>} : vector<5x3xbf16>, vector<3x128xbf16>, vector<5x128xf32> -> vector<5x128xf32>
    %175 = arith.addf %157, %174 : vector<5x128xf32>
    %c0_84 = arith.constant 0 : index
    %c0_85 = arith.constant 0 : index
    %c0_86 = arith.constant 0 : index
    %176 = vector.load %arg14[%c0_84, %c0_85, %c0_86] : memref<1x6x128xf32, #tpu.memory_space<vmem>>, vector<1x6x128xf32>
    %177 = vector.shape_cast %176 : vector<1x6x128xf32> to vector<6x128xf32>
    %178 = vector.shape_cast %71 : vector<6x128xf32> to vector<1x6x128xf32>
    tpu.vector_store %arg14[%c0_84, %c0_85, %c0_86], %178 {strides = array<i32>} : memref<1x6x128xf32, #tpu.memory_space<vmem>>, vector<1x6x128xf32>,
    %c0_87 = arith.constant 0 : index
    %c0_88 = arith.constant 0 : index
    %c0_89 = arith.constant 0 : index
    %179 = vector.load %arg15[%c0_87, %c0_88, %c0_89] : memref<1x5x128xf32, #tpu.memory_space<vmem>>, vector<1x5x128xf32>
    %180 = vector.shape_cast %179 : vector<1x5x128xf32> to vector<5x128xf32>
    %181 = vector.shape_cast %175 : vector<5x128xf32> to vector<1x5x128xf32>
    tpu.vector_store %arg15[%c0_87, %c0_88, %c0_89], %181 {strides = array<i32>} : memref<1x5x128xf32, #tpu.memory_space<vmem>>, vector<1x5x128xf32>,
    %cst_90 = arith.constant dense<0.000000e+00> : vector<6xf32>
    %182 = vector.multi_reduction <add>, %71, %cst_90 [1] : vector<6x128xf32> to vector<6xf32>
    %183 = vector.shape_cast %182 : vector<6xf32> to vector<6x1xf32>
    %184 = arith.mulf %71, %71 : vector<6x128xf32>
    %cst_91 = arith.constant dense<0.000000e+00> : vector<6xf32>
    %185 = vector.multi_reduction <add>, %184, %cst_91 [1] : vector<6x128xf32> to vector<6xf32>
    %186 = vector.shape_cast %185 : vector<6xf32> to vector<6x1xf32>
    %187 = tpu.concatenate %183, %186 in 1 : vector<6x1xf32>, vector<6x1xf32> -> vector<6x2xf32>
    %c0_92 = arith.constant 0 : index
    %c0_93 = arith.constant 0 : index
    %c0_94 = arith.constant 0 : index
    %c0_95 = arith.constant 0 : index
    %188 = vector.load %arg16[%c0_92, %c0_93, %c0_94, %c0_95] : memref<1x1x6x2xf32, #tpu.memory_space<vmem>>, vector<1x1x6x2xf32>
    %189 = vector.shape_cast %188 : vector<1x1x6x2xf32> to vector<6x2xf32>
    %190 = vector.shape_cast %187 : vector<6x2xf32> to vector<1x1x6x2xf32>
    tpu.vector_store %arg16[%c0_92, %c0_93, %c0_94, %c0_95], %190 {strides = array<i32>} : memref<1x1x6x2xf32, #tpu.memory_space<vmem>>, vector<1x1x6x2xf32>,
    %cst_96 = arith.constant dense<0.000000e+00> : vector<5xf32>
    %191 = vector.multi_reduction <add>, %175, %cst_96 [1] : vector<5x128xf32> to vector<5xf32>
    %192 = vector.shape_cast %191 : vector<5xf32> to vector<5x1xf32>
    %193 = arith.mulf %175, %175 : vector<5x128xf32>
    %cst_97 = arith.constant dense<0.000000e+00> : vector<5xf32>
    %194 = vector.multi_reduction <add>, %193, %cst_97 [1] : vector<5x128xf32> to vector<5xf32>
    %195 = vector.shape_cast %194 : vector<5xf32> to vector<5x1xf32>
    %196 = tpu.concatenate %192, %195 in 1 : vector<5x1xf32>, vector<5x1xf32> -> vector<5x2xf32>
    %c0_98 = arith.constant 0 : index
    %c0_99 = arith.constant 0 : index
    %c0_100 = arith.constant 0 : index
    %c0_101 = arith.constant 0 : index
    %197 = vector.load %arg17[%c0_98, %c0_99, %c0_100, %c0_101] : memref<1x1x5x2xf32, #tpu.memory_space<vmem>>, vector<1x1x5x2xf32>
    %198 = vector.shape_cast %197 : vector<1x1x5x2xf32> to vector<5x2xf32>
    %199 = vector.shape_cast %196 : vector<5x2xf32> to vector<1x1x5x2xf32>
    tpu.vector_store %arg17[%c0_98, %c0_99, %c0_100, %c0_101], %199 {strides = array<i32>} : memref<1x1x5x2xf32, #tpu.memory_space<vmem>>, vector<1x1x5x2xf32>,
    return
  }
  func.func @transform_0(%arg0: i32, %arg1: i32) -> (i32, i32, i32) {
    %c1_i32 = arith.constant 1 : i32
    %0 = arith.subi %arg1, %c1_i32 : i32
    %c0_i32 = arith.constant 0 : i32
    %1 = arith.maxsi %0, %c0_i32 : i32
    %c0_i32_0 = arith.constant 0 : i32
    %c0_i32_1 = arith.constant 0 : i32
    return %arg0, %c0_i32_0, %1 : i32, i32, i32
  }
  func.func @transform_1(%arg0: i32, %arg1: i32) -> (i32, i32, i32) {
    %c0_i32 = arith.constant 0 : i32
    %c0_i32_0 = arith.constant 0 : i32
    return %arg0, %c0_i32, %arg1 : i32, i32, i32
  }
  func.func @transform_2(%arg0: i32, %arg1: i32) -> (i32, i32, i32) {
    %c1_i32 = arith.constant 1 : i32
    %0 = arith.addi %arg1, %c1_i32 : i32
    %c3_i32 = arith.constant 3 : i32
    %1 = arith.minsi %0, %c3_i32 : i32
    %c0_i32 = arith.constant 0 : i32
    %c0_i32_0 = arith.constant 0 : i32
    return %arg0, %c0_i32, %1 : i32, i32, i32
  }
  func.func @transform_3(%arg0: i32, %arg1: i32) -> (i32, i32, i32) {
    %c1_i32 = arith.constant 1 : i32
    %0 = arith.subi %arg1, %c1_i32 : i32
    %c0_i32 = arith.constant 0 : i32
    %1 = arith.maxsi %0, %c0_i32 : i32
    %c0_i32_0 = arith.constant 0 : i32
    %c0_i32_1 = arith.constant 0 : i32
    return %arg0, %c0_i32_0, %1 : i32, i32, i32
  }
  func.func @transform_4(%arg0: i32, %arg1: i32) -> (i32, i32, i32) {
    %c0_i32 = arith.constant 0 : i32
    %c0_i32_0 = arith.constant 0 : i32
    return %arg0, %c0_i32, %arg1 : i32, i32, i32
  }
  func.func @transform_5(%arg0: i32, %arg1: i32) -> (i32, i32, i32) {
    %c1_i32 = arith.constant 1 : i32
    %0 = arith.addi %arg1, %c1_i32 : i32
    %c3_i32 = arith.constant 3 : i32
    %1 = arith.minsi %0, %c3_i32 : i32
    %c0_i32 = arith.constant 0 : i32
    %c0_i32_0 = arith.constant 0 : i32
    return %arg0, %c0_i32, %1 : i32, i32, i32
  }
  func.func @transform_6(%arg0: i32, %arg1: i32) -> (i32, i32) {
    %c0_i32 = arith.constant 0 : i32
    %c0_i32_0 = arith.constant 0 : i32
    %c0_i32_1 = arith.constant 0 : i32
    return %c0_i32, %c0_i32_0 : i32, i32
  }
  func.func @transform_7(%arg0: i32, %arg1: i32) -> (i32, i32) {
    %c0_i32 = arith.constant 0 : i32
    %c0_i32_0 = arith.constant 0 : i32
    %c0_i32_1 = arith.constant 0 : i32
    return %c0_i32, %c0_i32_0 : i32, i32
  }
  func.func @transform_8(%arg0: i32, %arg1: i32) -> (i32, i32) {
    %c0_i32 = arith.constant 0 : i32
    %c0_i32_0 = arith.constant 0 : i32
    %c0_i32_1 = arith.constant 0 : i32
    return %c0_i32, %c0_i32_0 : i32, i32
  }
  func.func @transform_9(%arg0: i32, %arg1: i32) -> (i32, i32) {
    %c0_i32 = arith.constant 0 : i32
    %c0_i32_0 = arith.constant 0 : i32
    %c0_i32_1 = arith.constant 0 : i32
    return %c0_i32, %c0_i32_0 : i32, i32
  }
  func.func @transform_10(%arg0: i32, %arg1: i32) -> (i32, i32, i32) {
    %c0_i32 = arith.constant 0 : i32
    %c0_i32_0 = arith.constant 0 : i32
    %c0_i32_1 = arith.constant 0 : i32
    %c0_i32_2 = arith.constant 0 : i32
    return %c0_i32, %c0_i32_0, %c0_i32_1 : i32, i32, i32
  }
  func.func @transform_11(%arg0: i32, %arg1: i32) -> (i32, i32, i32) {
    %c0_i32 = arith.constant 0 : i32
    %c0_i32_0 = arith.constant 0 : i32
    %c0_i32_1 = arith.constant 0 : i32
    %c0_i32_2 = arith.constant 0 : i32
    return %c0_i32, %c0_i32_0, %c0_i32_1 : i32, i32, i32
  }
  func.func @transform_12(%arg0: i32, %arg1: i32) -> (i32, i32, i32) {
    %c0_i32 = arith.constant 0 : i32
    %c0_i32_0 = arith.constant 0 : i32
    return %arg0, %c0_i32, %arg1 : i32, i32, i32
  }
  func.func @transform_13(%arg0: i32, %arg1: i32) -> (i32, i32, i32) {
    %c0_i32 = arith.constant 0 : i32
    %c0_i32_0 = arith.constant 0 : i32
    return %arg0, %c0_i32, %arg1 : i32, i32, i32
  }
  func.func @transform_14(%arg0: i32, %arg1: i32) -> (i32, i32, i32, i32) {
    %c0_i32 = arith.constant 0 : i32
    %c0_i32_0 = arith.constant 0 : i32
    %c0_i32_1 = arith.constant 0 : i32
    return %arg0, %arg1, %c0_i32, %c0_i32_0 : i32, i32, i32, i32
  }
  func.func @transform_15(%arg0: i32, %arg1: i32) -> (i32, i32, i32, i32) {
    %c0_i32 = arith.constant 0 : i32
    %c0_i32_0 = arith.constant 0 : i32
    %c0_i32_1 = arith.constant 0 : i32
    return %arg0, %arg1, %c0_i32, %c0_i32_0 : i32, i32, i32, i32
  }
}

module attributes {stable_mosaic.version = 11 : i64} {
  func.func @_stage3_kernel(%arg0: i32, %arg1: i32, %arg2: memref<1x4x128xf32, #tpu.memory_space<vmem>>, %arg3: memref<1x6x128xf32, #tpu.memory_space<vmem>>, %arg4: memref<1x5x128xf32, #tpu.memory_space<vmem>>, %arg5: memref<1x2x128xf32, #tpu.memory_space<vmem>>, %arg6: memref<4x1xf32, #tpu.memory_space<vmem>>, %arg7: memref<4x1xf32, #tpu.memory_space<vmem>>, %arg8: memref<6x1xf32, #tpu.memory_space<vmem>>, %arg9: memref<6x1xf32, #tpu.memory_space<vmem>>, %arg10: memref<5x1xf32, #tpu.memory_space<vmem>>, %arg11: memref<5x1xf32, #tpu.memory_space<vmem>>, %arg12: memref<2x1xf32, #tpu.memory_space<vmem>>, %arg13: memref<2x1xf32, #tpu.memory_space<vmem>>, %arg14: memref<1x17x128xf32, #tpu.memory_space<vmem>>) attributes {dimension_semantics = [#tpu.dimension_semantics<parallel>, #tpu.dimension_semantics<parallel>], iteration_bounds = array<i64: 2, 4>, scalar_prefetch = 0 : i64, scratch_operands = 0 : i64, tpu.core_type = #tpu.core_type<tc>, window_params = [{transform_indices = @transform_0, window_bounds = array<i64: 1, 4, 128>}, {transform_indices = @transform_1, window_bounds = array<i64: 1, 6, 128>}, {transform_indices = @transform_2, window_bounds = array<i64: 1, 5, 128>}, {transform_indices = @transform_3, window_bounds = array<i64: 1, 2, 128>}, {pipeline_mode = #tpu.pipeline_mode<synchronous>, transform_indices = @transform_4, window_bounds = array<i64: 4, 1>}, {pipeline_mode = #tpu.pipeline_mode<synchronous>, transform_indices = @transform_5, window_bounds = array<i64: 4, 1>}, {pipeline_mode = #tpu.pipeline_mode<synchronous>, transform_indices = @transform_6, window_bounds = array<i64: 6, 1>}, {pipeline_mode = #tpu.pipeline_mode<synchronous>, transform_indices = @transform_7, window_bounds = array<i64: 6, 1>}, {pipeline_mode = #tpu.pipeline_mode<synchronous>, transform_indices = @transform_8, window_bounds = array<i64: 5, 1>}, {pipeline_mode = #tpu.pipeline_mode<synchronous>, transform_indices = @transform_9, window_bounds = array<i64: 5, 1>}, {pipeline_mode = #tpu.pipeline_mode<synchronous>, transform_indices = @transform_10, window_bounds = array<i64: 2, 1>}, {pipeline_mode = #tpu.pipeline_mode<synchronous>, transform_indices = @transform_11, window_bounds = array<i64: 2, 1>}, {transform_indices = @transform_12, window_bounds = array<i64: 1, 17, 128>}]} {
    %c0 = arith.constant 0 : index
    %c0_0 = arith.constant 0 : index
    %c0_1 = arith.constant 0 : index
    %0 = vector.load %arg2[%c0, %c0_0, %c0_1] : memref<1x4x128xf32, #tpu.memory_space<vmem>>, vector<1x4x128xf32>
    %1 = vector.shape_cast %0 : vector<1x4x128xf32> to vector<4x128xf32>
    %c0_2 = arith.constant 0 : index
    %c0_3 = arith.constant 0 : index
    %2 = vector.load %arg6[%c0_2, %c0_3] : memref<4x1xf32, #tpu.memory_space<vmem>>, vector<4x1xf32>
    %c0_4 = arith.constant 0 : index
    %c0_5 = arith.constant 0 : index
    %3 = vector.load %arg7[%c0_4, %c0_5] : memref<4x1xf32, #tpu.memory_space<vmem>>, vector<4x1xf32>
    %4 = vector.broadcast %2 : vector<4x1xf32> to vector<4x128xf32>
    %5 = arith.mulf %1, %4 : vector<4x128xf32>
    %6 = vector.broadcast %3 : vector<4x1xf32> to vector<4x128xf32>
    %7 = arith.addf %5, %6 : vector<4x128xf32>
    %cst = arith.constant 0.000000e+00 : f32
    %8 = vector.broadcast %cst : f32 to vector<4x128xf32>
    %9 = arith.maximumf %7, %8 : vector<4x128xf32>
    %c0_6 = arith.constant 0 : index
    %c0_7 = arith.constant 0 : index
    %c0_8 = arith.constant 0 : index
    %10 = vector.load %arg14[%c0_6, %c0_7, %c0_8] : memref<1x17x128xf32, #tpu.memory_space<vmem>>, vector<1x4x128xf32>
    %11 = vector.shape_cast %10 : vector<1x4x128xf32> to vector<4x128xf32>
    %12 = vector.shape_cast %9 : vector<4x128xf32> to vector<1x4x128xf32>
    tpu.vector_store %arg14[%c0_6, %c0_7, %c0_8], %12 {strides = array<i32>} : memref<1x17x128xf32, #tpu.memory_space<vmem>>, vector<1x4x128xf32>,
    %c0_9 = arith.constant 0 : index
    %c0_10 = arith.constant 0 : index
    %c0_11 = arith.constant 0 : index
    %13 = vector.load %arg3[%c0_9, %c0_10, %c0_11] : memref<1x6x128xf32, #tpu.memory_space<vmem>>, vector<1x6x128xf32>
    %14 = vector.shape_cast %13 : vector<1x6x128xf32> to vector<6x128xf32>
    %c0_12 = arith.constant 0 : index
    %c0_13 = arith.constant 0 : index
    %15 = vector.load %arg8[%c0_12, %c0_13] : memref<6x1xf32, #tpu.memory_space<vmem>>, vector<6x1xf32>
    %c0_14 = arith.constant 0 : index
    %c0_15 = arith.constant 0 : index
    %16 = vector.load %arg9[%c0_14, %c0_15] : memref<6x1xf32, #tpu.memory_space<vmem>>, vector<6x1xf32>
    %17 = vector.broadcast %15 : vector<6x1xf32> to vector<6x128xf32>
    %18 = arith.mulf %14, %17 : vector<6x128xf32>
    %19 = vector.broadcast %16 : vector<6x1xf32> to vector<6x128xf32>
    %20 = arith.addf %18, %19 : vector<6x128xf32>
    %cst_16 = arith.constant 0.000000e+00 : f32
    %21 = vector.broadcast %cst_16 : f32 to vector<6x128xf32>
    %22 = arith.maximumf %20, %21 : vector<6x128xf32>
    %c0_17 = arith.constant 0 : index
    %c4 = arith.constant 4 : index
    %c0_18 = arith.constant 0 : index
    %23 = vector.load %arg14[%c0_17, %c4, %c0_18] : memref<1x17x128xf32, #tpu.memory_space<vmem>>, vector<1x6x128xf32>
    %24 = vector.shape_cast %23 : vector<1x6x128xf32> to vector<6x128xf32>
    %25 = vector.shape_cast %22 : vector<6x128xf32> to vector<1x6x128xf32>
    tpu.vector_store %arg14[%c0_17, %c4, %c0_18], %25 {strides = array<i32>} : memref<1x17x128xf32, #tpu.memory_space<vmem>>, vector<1x6x128xf32>,
    %c0_19 = arith.constant 0 : index
    %c0_20 = arith.constant 0 : index
    %c0_21 = arith.constant 0 : index
    %26 = vector.load %arg4[%c0_19, %c0_20, %c0_21] : memref<1x5x128xf32, #tpu.memory_space<vmem>>, vector<1x5x128xf32>
    %27 = vector.shape_cast %26 : vector<1x5x128xf32> to vector<5x128xf32>
    %c0_22 = arith.constant 0 : index
    %c0_23 = arith.constant 0 : index
    %28 = vector.load %arg10[%c0_22, %c0_23] : memref<5x1xf32, #tpu.memory_space<vmem>>, vector<5x1xf32>
    %c0_24 = arith.constant 0 : index
    %c0_25 = arith.constant 0 : index
    %29 = vector.load %arg11[%c0_24, %c0_25] : memref<5x1xf32, #tpu.memory_space<vmem>>, vector<5x1xf32>
    %30 = vector.broadcast %28 : vector<5x1xf32> to vector<5x128xf32>
    %31 = arith.mulf %27, %30 : vector<5x128xf32>
    %32 = vector.broadcast %29 : vector<5x1xf32> to vector<5x128xf32>
    %33 = arith.addf %31, %32 : vector<5x128xf32>
    %cst_26 = arith.constant 0.000000e+00 : f32
    %34 = vector.broadcast %cst_26 : f32 to vector<5x128xf32>
    %35 = arith.maximumf %33, %34 : vector<5x128xf32>
    %c0_27 = arith.constant 0 : index
    %c10 = arith.constant 10 : index
    %c0_28 = arith.constant 0 : index
    %36 = vector.load %arg14[%c0_27, %c10, %c0_28] : memref<1x17x128xf32, #tpu.memory_space<vmem>>, vector<1x5x128xf32>
    %37 = vector.shape_cast %36 : vector<1x5x128xf32> to vector<5x128xf32>
    %38 = vector.shape_cast %35 : vector<5x128xf32> to vector<1x5x128xf32>
    tpu.vector_store %arg14[%c0_27, %c10, %c0_28], %38 {strides = array<i32>} : memref<1x17x128xf32, #tpu.memory_space<vmem>>, vector<1x5x128xf32>,
    %c0_29 = arith.constant 0 : index
    %c0_30 = arith.constant 0 : index
    %c0_31 = arith.constant 0 : index
    %39 = vector.load %arg5[%c0_29, %c0_30, %c0_31] : memref<1x2x128xf32, #tpu.memory_space<vmem>>, vector<1x2x128xf32>
    %40 = vector.shape_cast %39 : vector<1x2x128xf32> to vector<2x128xf32>
    %c0_32 = arith.constant 0 : index
    %c0_33 = arith.constant 0 : index
    %41 = vector.load %arg12[%c0_32, %c0_33] : memref<2x1xf32, #tpu.memory_space<vmem>>, vector<2x1xf32>
    %c0_34 = arith.constant 0 : index
    %c0_35 = arith.constant 0 : index
    %42 = vector.load %arg13[%c0_34, %c0_35] : memref<2x1xf32, #tpu.memory_space<vmem>>, vector<2x1xf32>
    %43 = vector.broadcast %41 : vector<2x1xf32> to vector<2x128xf32>
    %44 = arith.mulf %40, %43 : vector<2x128xf32>
    %45 = vector.broadcast %42 : vector<2x1xf32> to vector<2x128xf32>
    %46 = arith.addf %44, %45 : vector<2x128xf32>
    %cst_36 = arith.constant 0.000000e+00 : f32
    %47 = vector.broadcast %cst_36 : f32 to vector<2x128xf32>
    %48 = arith.maximumf %46, %47 : vector<2x128xf32>
    %c0_37 = arith.constant 0 : index
    %c15 = arith.constant 15 : index
    %c0_38 = arith.constant 0 : index
    %49 = vector.load %arg14[%c0_37, %c15, %c0_38] : memref<1x17x128xf32, #tpu.memory_space<vmem>>, vector<1x2x128xf32>
    %50 = vector.shape_cast %49 : vector<1x2x128xf32> to vector<2x128xf32>
    %51 = vector.shape_cast %48 : vector<2x128xf32> to vector<1x2x128xf32>
    tpu.vector_store %arg14[%c0_37, %c15, %c0_38], %51 {strides = array<i32>} : memref<1x17x128xf32, #tpu.memory_space<vmem>>, vector<1x2x128xf32>,
    return
  }
  func.func @transform_0(%arg0: i32, %arg1: i32) -> (i32, i32, i32) {
    %c0_i32 = arith.constant 0 : i32
    %c0_i32_0 = arith.constant 0 : i32
    return %arg0, %c0_i32, %arg1 : i32, i32, i32
  }
  func.func @transform_1(%arg0: i32, %arg1: i32) -> (i32, i32, i32) {
    %c0_i32 = arith.constant 0 : i32
    %c0_i32_0 = arith.constant 0 : i32
    return %arg0, %c0_i32, %arg1 : i32, i32, i32
  }
  func.func @transform_2(%arg0: i32, %arg1: i32) -> (i32, i32, i32) {
    %c0_i32 = arith.constant 0 : i32
    %c0_i32_0 = arith.constant 0 : i32
    return %arg0, %c0_i32, %arg1 : i32, i32, i32
  }
  func.func @transform_3(%arg0: i32, %arg1: i32) -> (i32, i32, i32) {
    %c0_i32 = arith.constant 0 : i32
    %c0_i32_0 = arith.constant 0 : i32
    return %arg0, %c0_i32, %arg1 : i32, i32, i32
  }
  func.func @transform_4(%arg0: i32, %arg1: i32) -> (i32, i32) {
    %c0_i32 = arith.constant 0 : i32
    %c0_i32_0 = arith.constant 0 : i32
    %c0_i32_1 = arith.constant 0 : i32
    return %c0_i32, %c0_i32_0 : i32, i32
  }
  func.func @transform_5(%arg0: i32, %arg1: i32) -> (i32, i32) {
    %c0_i32 = arith.constant 0 : i32
    %c0_i32_0 = arith.constant 0 : i32
    %c0_i32_1 = arith.constant 0 : i32
    return %c0_i32, %c0_i32_0 : i32, i32
  }
  func.func @transform_6(%arg0: i32, %arg1: i32) -> (i32, i32) {
    %c0_i32 = arith.constant 0 : i32
    %c0_i32_0 = arith.constant 0 : i32
    %c0_i32_1 = arith.constant 0 : i32
    return %c0_i32, %c0_i32_0 : i32, i32
  }
  func.func @transform_7(%arg0: i32, %arg1: i32) -> (i32, i32) {
    %c0_i32 = arith.constant 0 : i32
    %c0_i32_0 = arith.constant 0 : i32
    %c0_i32_1 = arith.constant 0 : i32
    return %c0_i32, %c0_i32_0 : i32, i32
  }
  func.func @transform_8(%arg0: i32, %arg1: i32) -> (i32, i32) {
    %c0_i32 = arith.constant 0 : i32
    %c0_i32_0 = arith.constant 0 : i32
    %c0_i32_1 = arith.constant 0 : i32
    return %c0_i32, %c0_i32_0 : i32, i32
  }
  func.func @transform_9(%arg0: i32, %arg1: i32) -> (i32, i32) {
    %c0_i32 = arith.constant 0 : i32
    %c0_i32_0 = arith.constant 0 : i32
    %c0_i32_1 = arith.constant 0 : i32
    return %c0_i32, %c0_i32_0 : i32, i32
  }
  func.func @transform_10(%arg0: i32, %arg1: i32) -> (i32, i32) {
    %c0_i32 = arith.constant 0 : i32
    %c0_i32_0 = arith.constant 0 : i32
    %c0_i32_1 = arith.constant 0 : i32
    return %c0_i32, %c0_i32_0 : i32, i32
  }
  func.func @transform_11(%arg0: i32, %arg1: i32) -> (i32, i32) {
    %c0_i32 = arith.constant 0 : i32
    %c0_i32_0 = arith.constant 0 : i32
    %c0_i32_1 = arith.constant 0 : i32
    return %c0_i32, %c0_i32_0 : i32, i32
  }
  func.func @transform_12(%arg0: i32, %arg1: i32) -> (i32, i32, i32) {
    %c0_i32 = arith.constant 0 : i32
    %c0_i32_0 = arith.constant 0 : i32
    return %arg0, %c0_i32, %arg1 : i32, i32, i32
  }
}

</mosaic_0001>

<bundles_post_ra>
// kernel: inception_forward.3
= control target key start
LH: loop header
LB: loop body
LE: loop exit
PB: predicated region body
PF: predicated region fallthrough
CT: control target
= control target key end

     0   :  { %s1563_s21 = smov 0   ;;  %s1565_s22 = smov 0   ;;  %s1690_s0 = inlined_call_operand.vmem [shape: f32[2,4,512], index: 0, kind: input, shape index: {}, may-alias: {0,1,2}]   ;;  %s1691_s1 = inlined_call_operand.vmem [shape: f32[2,4,512], index: 1, kind: input, shape index: {}, may-alias: {0,1,2}]   ;;  %s1692_s2 = inlined_call_operand.vmem [shape: f32[2,4,512], index: 2, kind: input, shape index: {}, may-alias: {0,1,2}]   ;;  %s1693_s3 = inlined_call_operand.vmem [shape: bf16[10,4], index: 3, kind: input, shape index: {}]   ;;  %s1694_s4 = inlined_call_operand.vmem [shape: bf16[2,4], index: 4, kind: input, shape index: {}]   ;;  %s1695_s5 = inlined_call_operand.vmem [shape: f32[2,4,512], index: 5, kind: output, shape index: {0}]   ;;  %s1696_s6 = inlined_call_operand.vmem [shape: f32[2,3,512], index: 6, kind: output, shape index: {1}]   ;;  %s1697_s7 = inlined_call_operand.vmem [shape: f32[2,3,512], index: 7, kind: output, shape index: {2}]   ;;  %s1698_s8 = inlined_call_operand.vmem [shape: f32[2,2,512], index: 8, kind: output, shape index: {3}]   ;;  %s1699_s9 = inlined_call_operand.vmem [shape: f32[2,4,4,2], index: 9, kind: output, shape index: {4}]   ;;  %s1700_s10 = inlined_call_operand.vmem [shape: f32[2,4,3,2], index: 10, kind: output, shape index: {5}]   ;;  %s1701_s11 = inlined_call_operand.vmem [shape: f32[2,4,3,2], index: 11, kind: output, shape index: {6}]   ;;  %s1702_s12 = inlined_call_operand.vmem [shape: f32[2,4,2,2], index: 12, kind: output, shape index: {7}]  }
   0x1   :  { %s1567_s23 = smov 0   ;;  %s1569_s24 = smov 0  }
   0x2   :  { %s1571_s25 = smov 0  }
   0x3 LB: > { %s32_s26 = sadd.s32 1, %s1484_s23  ;;  %s35_s27 = sadd.s32 1, %s1488_s24  ;;  %s1492_s25 = sphi %s1571_s25, %s23_s25   ;;  %s1488_s24 = sphi %s1569_s24, %s1710_s24   ;;  %s1484_s23 = sphi %s1567_s23, %s1709_s23   ;;  %s1480_s22 = sphi %s1565_s22, %s1708_s22   ;;  %s1476_s21 = sphi %s1563_s21, %s1707_s21  }
   0x4   : > { %p33_p0 = scmp.ge.s32.totalorder %s32_s26, 4  ;;  %p1343_p1 = scmp.ge.s32.totalorder %s1492_s25, 1 }
   0x5   : > { %p464_p2 = scmp.lt.s32.totalorder %s1492_s25, 9 }
   0x6   : > { %s1712_s26 = smov (%p33_p0, %s32_s26), 0  ;;  %s1714_s27 = smov (!%p33_p0, %s35_s27), %s1488_s24 }
   0x7   : > { %1703 = sst [smem:[#allocation2_spill]] %s1712_s26  ;;  %p465_p3 = pnand %p1343_p1, %p464_p2 }
   0x8   : > { %p37_p4 = scmp.ge.s32.totalorder %s1714_s27, 2  ;;  %s1344_s28 = sadd.s32 (!%p465_p3), 4294967295, %s1476_s21  ;;  %v1494_v0 = vmov (!%p465_p3), 0.0   ;;  %vm1495_vm0 = vmmov (!%p465_p3), 0   ;;  %vm711_vm1 = vcmask (!%p465_p3), 1041408   ;;  %vm707_vm2 = vcmask (!%p465_p3), 31744  }
   0x9   : > { %468 = sbr.rel (%p465_p3) target bundleno = 520 (0x208), region = 40  ;;  %p593_p5 = scmp.lt.s32.totalorder (!%p465_p3), %s1480_s22, 1  ;;  %1387 = vmatprep.subr.bf16.mxu0 (!%p465_p3), %v1494_v0  ;;  %1389 = vmatprep.mubr.msk.bf16.mxu0 (!%p465_p3), %vm1495_vm0, %v1494_v0  ;;  %v1453_v6 = vld [vmem:[%s1693_s3] sm:$0x1f] (!%p465_p3)   ;;  %v691_v9 = vlaneseq (!%p465_p3)  ;;  %vm835_vm7 = vcmask (!%p465_p3), 1043456   ;;  %vm857_vm8 = vcmask (!%p465_p3), 1047559  }
   0xa   : > { %s1716_s27 = smov (%p37_p4, %s1714_s27), 0  ;;  %p591_p6 = scmp.gt.s32.totalorder (!%p465_p3), %s1344_s28, 0  ;;  %1393 = vmatprep.subr.bf16.mxu1 (!%p465_p3), %v1494_v0  ;;  %1395 = vmatprep.mubr.msk.bf16.mxu1 (!%p465_p3), %vm1495_vm0, %v1494_v0  ;;  %v782_v27 = vld [vmem:[%s1694_s4] sm:$0x1] (!%p465_p3)  ;;  %vm847_vm9 = vcmask (!%p465_p3), 1046532   ;;  %vm843_vm10 = vcmask (!%p465_p3), 7168  }
   0xb   : > { %1704 = sst [smem:[#allocation3_spill]] %s1716_s27  ;;  %p1345_p7 = scmp.lt.s32.totalorder (!%p465_p3), %s1344_s28, 3  ;;  %v692_v10 = vand.u32 (!%p465_p3), 127, %v691_v9  ;;  %vm845_vm11 = vcmask (!%p465_p3), 11264   ;;  %vm855_vm12 = vcmask (!%p465_p3), 14340   ;;  %vm873_vm13 = vcmask (!%p465_p3), 15367  }
   0xc   : > { %p606_p8 = scmp.lt.s32.totalorder (!%p465_p3), %s1476_s21, 3  ;;  %s1375_s20 = sshll.u32 (!%p465_p3), %s1476_s21, 7  ;;  %vm875_vm14 = vcmask (!%p465_p3), 9216  }
   0xd   : > { %v694_v11 = vstv (!%p465_p3), %s1375_s20  ;;  %vm760_vm3 = vcmp.ge.s32.totalorder (!%p465_p3), %v692_v10, 1  ;;  %vm772_vm5 = vcmp.lt.s32.totalorder (!%p465_p3), %v692_v10, 127 }
   0xe   : > { %v695_v15 = vadd.s32 (!%p465_p3), %v694_v11, %v692_v10 }
  0x10   : > { %s1718_s22 = smov (!%p593_p5, %s1480_s22), 1  ;;  %s1720_s28 = smov (!%p591_p6, %s1344_s28), 0  ;;  %vm764_vm4 = vcmp.ge.s32.totalorder %v695_v15, 1  ;;  %vm776_vm6 = vcmp.lt.s32.totalorder %v695_v15, 511 }
  0x11   : > { %s1350_s29 = sshll.u32 %s1718_s22, 2  ;;  %s1722_s28 = smov (!%p1345_p7, %s1720_s28), 3 }
  0x12   : > { %s607_s30 = scalar_select %p606_p8, %s1476_s21, 3 }
  0x13   : > { %s598_s13 = sadd.s32 %s1722_s28, %s1350_s29  ;;  %s612_s22 = sadd.s32 1, %s1476_s21 }
  0x14   : > { %s1351_s14 = sshll.u32 %s598_s13, 2  ;;  %s1598_s15 = sadd.s32 %s1350_s29, %s607_s30 }
  0x15   : > { %s600_s18 = scalar_lea.vmem %s1690_s0, %s1351_s14  ;;  %s1604_s19 = sshll.u32 %s1598_s15, 2 }
  0x16   : > { %s611_s26 = scalar_lea.vmem %s1691_s1, %s1604_s19  ;;  %v697_v1 = vld [vmem:[%s600_s18] sm:$0xf]  ;;  %p613_p9 = scmp.lt.s32.totalorder %s612_s22, 3 }
  0x17   : > { %v696_v2 = vld [vmem:[%s611_s26] sm:$0xf]  ;;  %s1496_s28 = smov 1   ;;  %s1497_s18 = smov 127  }
  0x18   : > { %v1443_v3 = vpack.i.bf16 %v697_v1, %v696_v2  ;;  %v699_v4 = vpack.c.bf16 %v696_v2, %v696_v2  ;;  %s1724_s22 = smov (!%p613_p9, %s612_s22), 3  ;;  %s633_s30 = scalar_lea.vmem %s1695_s5, %s1604_s19 }
  0x19   : > { %s1726_s22 = smov (!%p613_p9, %s1724_s22), 3 }
  0x1a   : > { %1444 = vrot.lane.b32.xlu0 %v1443_v3, %s1496_s28  ;;  %v713_v5 = vsel %vm711_vm1, %v699_v4, 0  ;;  %s620_s27 = sadd.s32 %s1350_s29, %s1726_s22 }
  0x1b   : > { %1388 = vmatpush3.bf16.msra.mxu0 %v713_v5  ;;  %s1358_s14 = sshll.u32 %s620_s27, 2 }
  0x1c   : > { %s622_s17 = scalar_lea.vmem %s1692_s2, %s1358_s14  ;;  %s641_s14 = scalar_lea.vmem %s1696_s6, %s1604_s19 }
  0x1d   : > { %v698_v7 = vld [vmem:[%s622_s17] sm:$0xf]  ;;  %s649_s17 = scalar_lea.vmem %s1697_s7, %s1604_s19 }
  0x1e   : > { %1390 = vmatmul.mubr.msk.bf16.vlgmr.msra.gmra.mrb[0].mxu0 %vm707_vm2, %v1453_v6  ;;  %v1448_v8 = vpack.i.bf16 %v698_v7, %v696_v2 }
  0x20   : > { %1449 = vrot.lane.b32.xlu0 %v1448_v8, %s1497_s18  ;;  %s1366_s18 = sshll.u32 %s1598_s15, 1 }
  0x21   : > { %s657_s29 = scalar_lea.vmem %s1698_s8, %s1366_s18 }
  0x8c   : > { %v1445_v12 = vpop.permute.xlu0 %1444 }
  0x8d   : > { %v1447_v13 = vunpack.i.h.bf16 %v1445_v12  ;;  %v1446_v14 = vunpack.i.l.bf16 %v1445_v12 }
  0x8f   : > { %v763_v16 = vsel %vm760_vm3, %v1446_v14, %v1447_v13 }
  0x90   : > { %v767_v18 = vsel %vm764_vm4, %v763_v16, %v696_v2 }
  0x91   : > { %v780_v22 = vmax.f32 %v767_v18, %v696_v2 }
  0x92   : > { %v1450_v17 = vpop.permute.xlu0 %1449 }
  0x93   : > { %v1452_v19 = vunpack.i.h.bf16 %v1450_v17  ;;  %v1451_v20 = vunpack.i.l.bf16 %v1450_v17 }
  0x95   : > { %v775_v21 = vsel %vm772_vm5, %v1451_v20, %v1452_v19 }
  0x96   : > { %v779_v23 = vsel %vm776_vm6, %v775_v21, %v696_v2 }
  0x97   : > { %v781_v24 = vmax.f32 %v780_v22, %v779_v23 }
  0x99   : > { %v783_v25 = vpack.c.bf16 %v781_v24, %v781_v24 }
  0x9b   : > { %v788_v26 = vsel %vm711_vm1, %v783_v25, 0 }
  0x9c   : > { %1394 = vmatpush3.bf16.msra.mxu1 %v788_v26 }
  0x9f   : > { %1396 = vmatmul.mubr.msk.bf16.vlgmr.msra.gmra.mrb[0].mxu1 %vm707_vm2, %v782_v27 }
  0xf1   : > { %v749_v28 = vpop.f32.mrb[0].mxu0 }
  0xf2   : > { %830 = vst [vmem:[%s633_s30] sm:$0xf] %v749_v28  ;;  %831 = vst [vmem:[%s641_s14 - $0x4] sm:$0x70] %v749_v28  ;;  %v836_v29 = vsel %vm835_vm7, %v749_v28, 0.0  ;;  %v1391_v30 = vpop.f32.mrb[1].mxu0  ;;  %v848_v31 = vsel %vm847_vm9, %v749_v28, 0.0  ;;  %v839_v34 = vmul.f32 %v749_v28, %v749_v28  ;;  %s665_s30 = scalar_lea.vmem %s1699_s9, %s1604_s19  ;;  %s673_s14 = scalar_lea.vmem %s1700_s10, %s1604_s19 }
  0xf3   : > { %832 = vst [vmem:[%s649_s17 - $0x7] sm:$0x80] %v749_v28  ;;  %837 = vadd.xlane.f32.xlu1 %v836_v29  ;;  %v752_v32 = vpop.f32.mrb[2].mxu0  ;;  %849 = vadd.xlane.f32.xlu0 %v848_v31  ;;  %v858_v33 = vsel %vm857_vm8, %v749_v28, 0.0 }
  0xf4   : > { %833 = vst [vmem:[%s649_s17 + $0x1] sm:$0x3] %v752_v32  ;;  %v1392_v35 = vpop.f32.mrb[3].mxu0  ;;  %v840_v36 = vsel %vm835_vm7, %v839_v34, 0.0  ;;  %v851_v37 = vsel %vm847_vm9, %v839_v34, 0.0  ;;  %v861_v38 = vsel %vm711_vm1, %v752_v32, 0.0  ;;  %v864_v40 = vmul.f32 %v752_v32, %v752_v32  ;;  %s681_s17 = scalar_lea.vmem %s1701_s11, %s1604_s19 }
  0xf5   : > { %v865_v39 = vsel %vm857_vm8, %v839_v34, 0.0 }
  0xf6   : > { %v868_v41 = vsel %vm711_vm1, %v864_v40, 0.0 }
  0xf7   : > { %859 = vadd.xlane.f32.xlu1 %v858_v33 }
  0xfb   : > { %841 = vadd.xlane.f32.xlu1 %v840_v36 }
  0xff   : > { %852 = vadd.xlane.f32.xlu1 %v851_v37 }
 0x103   : > { %862 = vadd.xlane.f32.xlu1 %v861_v38 }
 0x107   : > { %866 = vadd.xlane.f32.xlu1 %v865_v39 }
 0x10b   : > { %869 = vadd.xlane.f32.xlu1 %v868_v41 }
 0x172   : > { %v824_v42 = vpop.f32.mrb[0].mxu1 }
 0x173   : > { %834 = vst [vmem:[%s657_s29] sm:$0x3] %v824_v42  ;;  %v1397_v43 = vpop.f32.mrb[1].mxu1  ;;  %v877_v44 = vsel %vm711_vm1, %v824_v42, 0.0  ;;  %v880_v45 = vmul.f32 %v824_v42, %v824_v42  ;;  %s689_s29 = scalar_lea.vmem %s1702_s12, %s1366_s18 }
 0x174   : > { %878 = vadd.xlane.f32.xlu1 %v877_v44  ;;  %v827_v46 = vpop.f32.mrb[2].mxu1 }
 0x175   : > { %v1398_v47 = vpop.f32.mrb[3].mxu1  ;;  %v881_v48 = vsel %vm711_vm1, %v880_v45, 0.0 }
 0x178   : > { %882 = vadd.xlane.f32.xlu1 %v881_v48 }
 0x180   : > { %v838_v49 = vpop.xlane.xlu1 %837  ;;  %v850_v53 = vpop.xlane.xlu0 %849 }
 0x184   : > { %v860_v50 = vpop.xlane.xlu1 %859 }
 0x188   : > { %v842_v51 = vpop.xlane.xlu1 %841 }
 0x189   : > { %v844_v52 = vsel %vm843_vm10, %v838_v49, %v842_v51 }
 0x18a   : > { %846 = vst.msk [vmem:[%s665_s30] sm:$0xf] %vm845_vm11, %v844_v52 }
 0x18c   : > { %v853_v54 = vpop.xlane.xlu1 %852 }
 0x18d   : > { %v854_v55 = vsel %vm843_vm10, %v850_v53, %v853_v54 }
 0x18e   : > { %856 = vst.msk [vmem:[%s673_s14 - $0x4] sm:$0x70] %vm855_vm12, %v854_v55 }
 0x190   : > { %v863_v56 = vpop.xlane.xlu1 %862 }
 0x194   : > { %v867_v57 = vpop.xlane.xlu1 %866 }
 0x195   : > { %v871_v58 = vsel %vm843_vm10, %v860_v50, %v867_v57 }
 0x196   : > { %874 = vst.msk [vmem:[%s681_s17 - $0x7] sm:$0x80] %vm873_vm13, %v871_v58 }
 0x198   : > { %v870_v59 = vpop.xlane.xlu1 %869 }
 0x199   : > { %v872_v60 = vsel %vm843_vm10, %v863_v56, %v870_v59 }
 0x19a   : > { %876 = vst.msk [vmem:[%s681_s17 + $0x1] sm:$0x3] %vm875_vm14, %v872_v60 }
 0x201   : > { %v879_v61 = vpop.xlane.xlu1 %878 }
 0x205   : > { %v883_v62 = vpop.xlane.xlu1 %882 }
 0x206   : > { %v884_v63 = vsel %vm843_vm10, %v879_v61, %v883_v62 }
 0x207   : > { %885 = vst.msk [vmem:[%s689_s29] sm:$0x3] %vm875_vm14, %v884_v63 }
 0x208 PF: > { %s23_s25 = sadd.s32 1, %s1492_s25   ;;  %s1705_s19 = sld [smem:[#allocation2_spill]] }
 0x209   : > { %p20_p10 = scmp.ge.s32.totalorder %s23_s25, 10   ;;  %s1706_s28 = sld [smem:[#allocation3_spill]] }
 0x20a   : > { %s1707_s21 = smov %s1484_s23  ;;  %s1708_s22 = smov %s1488_s24 }
 0x20b   :  { %22 = sbr.rel (!%p20_p10) target bundleno = 3 (0x3), region = 160 }
 0x20e   : > { %s1709_s23 = smov %s1705_s19 }
 0x20f   : > { %s1710_s24 = smov %s1706_s28 }

// kernel: inception_forward.5
= control target key start
LH: loop header
LB: loop body
LE: loop exit
PB: predicated region body
PF: predicated region fallthrough
CT: control target
= control target key end

     0   :  { %s1096_s0 = inlined_call_operand.vmem [shape: f32[2,4,512], index: 0, kind: input, shape index: {}]   ;;  %s1097_s1 = inlined_call_operand.vmem [shape: f32[2,6,512], index: 1, kind: input, shape index: {}]   ;;  %s1098_s2 = inlined_call_operand.vmem [shape: f32[2,5,512], index: 2, kind: input, shape index: {}]   ;;  %s1099_s3 = inlined_call_operand.vmem [shape: f32[2,2,512], index: 3, kind: input, shape index: {}]   ;;  %s1100_s4 = inlined_call_operand.vmem [shape: f32[4,1], index: 4, kind: input, shape index: {}]   ;;  %s1101_s5 = inlined_call_operand.vmem [shape: f32[4,1], index: 5, kind: input, shape index: {}]   ;;  %s1102_s6 = inlined_call_operand.vmem [shape: f32[6,1], index: 6, kind: input, shape index: {}]   ;;  %s1103_s7 = inlined_call_operand.vmem [shape: f32[6,1], index: 7, kind: input, shape index: {}]   ;;  %s1104_s8 = inlined_call_operand.vmem [shape: f32[5,1], index: 8, kind: input, shape index: {}]   ;;  %s1105_s9 = inlined_call_operand.vmem [shape: f32[5,1], index: 9, kind: input, shape index: {}]   ;;  %s1106_s10 = inlined_call_operand.vmem [shape: f32[2,1], index: 10, kind: input, shape index: {}]   ;;  %s1107_s11 = inlined_call_operand.vmem [shape: f32[2,1], index: 11, kind: input, shape index: {}]   ;;  %s1108_s12 = inlined_call_operand.vmem [shape: f32[2,17,512], index: 12, kind: output, shape index: {}]  }
   0x1   :  { %1111 = sst [smem:[#allocation5_spill]] %s1100_s4 }
   0x2   :  { %1112 = sst [smem:[#allocation6_spill]] %s1101_s5 }
   0x3   :  { %1113 = sst [smem:[#allocation7_spill]] %s1102_s6 }
   0x4   :  { %1114 = sst [smem:[#allocation8_spill]] %s1103_s7 }
   0x5   :  { %1115 = sst [smem:[#allocation9_spill]] %s1104_s8 }
   0x6   :  { %1116 = sst [smem:[#allocation10_spill]] %s1105_s9 }
   0x7   :  { %1117 = sst [smem:[#allocation11_spill]] %s1106_s10 }
   0x8   :  { %1118 = sst [smem:[#allocation12_spill]] %s1107_s11 }
   0x9   :  { %s968_s21 = smov 0   ;;  %s970_s22 = smov 0  }
   0xa   :  { %s972_s23 = smov 0   ;;  %s974_s24 = smov 0  }
   0xb   :  { %s976_s25 = smov 0   ;;  %s978_s26 = smov 0  }
   0xc   :  { %s980_s27 = smov 0  }
   0xd LB: > { %s31_s28 = sadd.s32 1, %s892_s25  ;;  %s34_s29 = sadd.s32 1, %s896_s26  ;;  %s900_s27 = sphi %s980_s27, %s22_s27   ;;  %s896_s26 = sphi %s978_s26, %s1137_s26   ;;  %s892_s25 = sphi %s976_s25, %s1136_s25   ;;  %s888_s24 = sphi %s974_s24, %s1135_s24   ;;  %s884_s23 = sphi %s972_s23, %s1134_s23   ;;  %s880_s22 = sphi %s970_s22, %s1133_s22   ;;  %s876_s21 = sphi %s968_s21, %s1132_s21  }
   0xe   : > { %p32_p0 = scmp.ge.s32.totalorder %s31_s28, 4  ;;  %s769_s30 = sadd.s32 4294967295, %s900_s27  }
   0xf   : > { %p333_p1 = scmp.ne.s32.totalorder %s880_s22, %s876_s21  ;;  %p334_p2 = scmp.eq.s32.totalorder %s769_s30, 7 }
  0x10   : > { %s1139_s28 = smov (%p32_p0, %s31_s28), 0  ;;  %s1141_s29 = smov (!%p32_p0, %s34_s29), %s896_s26 }
  0x11   : > { %1119 = sst [smem:[#allocation3_spill]] %s1139_s28  ;;  %s319_s13 = ssub.s32 %s892_s25, %s1139_s28 }
  0x12   : > { %p36_p3 = scmp.ge.s32.totalorder %s1141_s29, 2  ;;  %p773_p4 = scmp.ge.s32.totalorder %s900_s27, 1 }
  0x13   : > { %p1014_p5 = por %p334_p2, %p333_p1  ;;  %p426_p6 = scmp.lt.s32.totalorder %s900_s27, 9 }
  0x14   : > { %s1143_s29 = smov (%p36_p3, %s1141_s29), 0  ;;  %s323_s17 = sadd.s32 1, %s880_s22 }
  0x15   : > { %1121 = sst [smem:[#allocation4_spill]] %s1143_s29  ;;  %p427_p7 = pnand %p773_p4, %p426_p6 }
  0x16   : > { %s318_s15 = ssub.s32 %s896_s26, %s1143_s29  ;;  %s1122_s8 = sld [smem:[#allocation9_spill]] (!%p427_p7)  ;;  %v902_v2 = vmov (!%p427_p7), 0  }
  0x17   : > { %s320_s16 = sor.u32 %s319_s13, %s318_s15  ;;  %430 = sbr.rel (%p427_p7) target bundleno = 184 (0xb8), region = 68  ;;  %845 = vset.pattern.permute.xlu1 (!%p427_p7), %v902_v2  ;;  %844 = vset.pattern.permute.xlu0 (!%p427_p7), %v902_v2 }
  0x18   : > { %p321_p8 = scmp.eq.s32.totalorder %s320_s16, 0  ;;  %s1123_s4 = sld [smem:[#allocation5_spill]] (!%p427_p7) }
  0x19   : > { %s1124_s10 = sld [smem:[#allocation11_spill]] (!%p427_p7)  ;;  %s1125_s6 = sld [smem:[#allocation7_spill]] (!%p427_p7) }
  0x1a   : > { %s1025_s18 = scalar_select %p321_p8, %s880_s22, %s323_s17  }
  0x1b   : > { %s1126_s7 = sld [smem:[#allocation8_spill]] (!%p427_p7)  ;;  %s1127_s5 = sld [smem:[#allocation6_spill]] (!%p427_p7) }
  0x1c   : > { %v561_v0 = vld [vmem:[%s1122_s8] sm:$0x1f] (!%p427_p7)  ;;  %s1128_s11 = sld [smem:[#allocation12_spill]] (!%p427_p7)  ;;  %s1129_s9 = sld [smem:[#allocation10_spill]] (!%p427_p7) }
  0x1d   : > { %565 = vperm.xlu1 (!%p427_p7), %845, %v561_v0   ;;  %p494_p9 = scmp.lt.s32.totalorder (!%p427_p7), %s888_s24, 1  ;;  %p496_p10 = scmp.lt.s32.totalorder (!%p427_p7), %s884_s23, 3 }
  0x1e   : > { %v527_v1 = vld [vmem:[%s1123_s4] sm:$0xf] }
  0x1f   : > { %531 = vperm.xlu0 %844, %v527_v1   ;;  %v578_v3 = vld [vmem:[%s1124_s10] sm:$0x3]  ;;  %s495_s16 = scalar_select %p494_p9, %s888_s24, 1 }
  0x20   : > { %v544_v4 = vld [vmem:[%s1125_s6] sm:$0x3f]  ;;  %s497_s17 = scalar_select %p496_p10, %s884_s23, 3 }
  0x21   : > { %582 = vperm.xlu1 %845, %v578_v3   ;;  %v545_v5 = vld [vmem:[%s1126_s7] sm:$0x3f]  ;;  %s774_s28 = sshll.u32 %s495_s16, 2 }
  0x22   : > { %v528_v6 = vld [vmem:[%s1127_s5] sm:$0xf]  ;;  %s499_s19 = sadd.s32 %s774_s28, %s497_s17 }
  0x23   : > { %548 = vperm.xlu0 %844, %v544_v4   ;;  %v579_v7 = vld [vmem:[%s1128_s11] sm:$0x3]  ;;  %s775_s20 = sshll.u32 %s499_s19, 2  ;;  %s777_s30 = sshll.u32 %s499_s19, 3 }
  0x24   : > { %v562_v8 = vld [vmem:[%s1129_s9] sm:$0x1f]  ;;  %s501_s13 = scalar_lea.vmem %s1096_s0, %s775_s20  ;;  %s509_s15 = scalar_lea.vmem %s1097_s1, %s777_s30 }
  0x25   : > { %554 = vperm.xlu1 %845, %v545_v5   ;;  %s781_s7 = sshll.u32 %s499_s19, 1  ;;  %s491_s9 = sand.u32 1, %s876_s21   ;;  %v526_v11 = vld [vmem:[%s501_s13] sm:$0xf] }
  0x26   : > { %v543_v14 = vld [vmem:[%s509_s15] sm:$0x3f]  ;;  %s517_s28 = scalar_lea.vmem %s1098_s2, %s777_s30  ;;  %s525_s29 = scalar_lea.vmem %s1099_s3, %s781_s7 }
  0x27   : > { %537 = vperm.xlu0 %844, %v528_v6   ;;  %s785_s5 = smul.u32 24, %s491_s9  ;;  %v560_v17 = vld [vmem:[%s517_s28] sm:$0x1f] }
  0x28   : > { %v577_v18 = vld [vmem:[%s525_s29] sm:$0x3]  ;;  %s786_s7 = smul.u32 (%p1014_p5), 12, %s888_s24 }
  0x29   : > { %588 = vperm.xlu1 %845, %v579_v7   ;;  %s493_s6 = scalar_lea.vmem [#allocation2], %s785_s5 }
  0x2a   : > { %s602_s9 = sadd.s32 (%p1014_p5), %s884_s23, %s786_s7 }
  0x2b   : > { %571 = vperm.xlu0 %844, %v562_v8   ;;  %s782_s10 = sshll.u32 (%p1014_p5), %s602_s9, 3 }
  0x2c   : > { %s604_s29 = scalar_lea.vmem (%p1014_p5), %s1108_s12, %s782_s10 }
  0x9c   : > { %v566_v9 = vpop.permute.xlu1 %565 }
  0x9d   : > { %v568_v23 = vmul.f32 %v566_v9, %v560_v17 }
  0x9e   : > { %v532_v10 = vpop.permute.xlu0 %531 }
  0x9f   : > { %v534_v15 = vmul.f32 %v532_v10, %v526_v11 }
  0xa0   : > { %v583_v12 = vpop.permute.xlu1 %582 }
  0xa1   : > { %v585_v24 = vmul.f32 %v583_v12, %v577_v18 }
  0xa2   : > { %v549_v13 = vpop.permute.xlu0 %548 }
  0xa3   : > { %v551_v16 = vmul.f32 %v549_v13, %v543_v14 }
  0xa4   : > { %v555_v19 = vpop.permute.xlu1 %554 }
  0xa5   : > { %v557_v21 = vadd.f32 %v555_v19, %v551_v16 }
  0xa6   : > { %v538_v20 = vpop.permute.xlu0 %537 }
  0xa7   : > { %v540_v22 = vadd.f32 %v538_v20, %v534_v15  ;;  %v558_v25 = vmax.f32 %v557_v21, 0.0 }
  0xa8   : > { %v589_v27 = vpop.permute.xlu1 %588 }
  0xa9   : > { %v541_v26 = vmax.f32 %v540_v22, 0.0  ;;  %559 = vst [vmem:[%s493_s6 + $0x4] sm:$0x3f] %v558_v25  ;;  %v591_v29 = vadd.f32 %v589_v27, %v585_v24  ;;  %600 = sbr.rel (!%p1014_p5) target bundleno = 184 (0xb8), region = 72 }
  0xaa   : > { %v572_v28 = vpop.permute.xlu0 %571 }
  0xab   : > { %542 = vst [vmem:[%s493_s6] sm:$0xf] %v541_v26  ;;  %v574_v30 = vadd.f32 %v572_v28, %v568_v23  ;;  %v592_v31 = vmax.f32 %v591_v29, 0.0 }
  0xad   : > { %v575_v32 = vmax.f32 %v574_v30, 0.0  ;;  %593 = vst [vmem:[%s493_s6 + $0xf] sm:$0x3] %v592_v31 }
  0xaf   : > { %576 = vst [vmem:[%s493_s6 + $0xa] sm:$0x1f] %v575_v32 }
  0xb2   : > { %v636_v33 = vld [vmem:[%s493_s6] sm:$0xff] }
  0xb3   : > { %637 = vst [vmem:[%s604_s29] sm:$0xff] %v636_v33 }
  0xb4   : > { %v640_v35 = vld [vmem:[%s493_s6 + $0x10] sm:$0xff] }
  0xb5   : > { %641 = vst [vmem:[%s604_s29 + $0x40] sm:$0xff] %v640_v35 }
  0xb6   : > { %v638_v34 = vld [vmem:[%s493_s6 + $0x8] sm:$0xff] }
  0xb7   : > { %639 = vst [vmem:[%s604_s29 + $0x20] sm:$0xff] %v638_v34 }
  0xb8 PF: > { %s22_s27 = sadd.s32 1, %s900_s27   ;;  %s1130_s14 = sld [smem:[#allocation3_spill]] }
  0xb9   : > { %p19_p11 = scmp.ge.s32.totalorder %s22_s27, 10   ;;  %s1131_s19 = sld [smem:[#allocation4_spill]] }
  0xba   : > { %s1132_s21 = smov %s880_s22  ;;  %s1133_s22 = smov %s1025_s18 }
  0xbb   : > { %s1134_s23 = smov %s892_s25  ;;  %s1135_s24 = smov %s896_s26 }
  0xbc   :  { %21 = sbr.rel (!%p19_p11) target bundleno = 13 (0xd), region = 145 }
  0xbe   : > { %s1136_s25 = smov %s1130_s14 }
  0xbf   : > { %s1137_s26 = smov %s1131_s19 }

// kernel: inception_forward.4
= control target key start
LH: loop header
LB: loop body
LE: loop exit
PB: predicated region body
PF: predicated region fallthrough
CT: control target
= control target key end

     0   :  { %s2042_s18 = smov 0   ;;  %s2044_s19 = smov 0   ;;  %s2251_s0 = inlined_call_operand.vmem [shape: f32[2,3,512], index: 0, kind: input, shape index: {}, may-alias: {0,1,2}]   ;;  %s2252_s1 = inlined_call_operand.vmem [shape: f32[2,3,512], index: 1, kind: input, shape index: {}, may-alias: {0,1,2}]   ;;  %s2253_s2 = inlined_call_operand.vmem [shape: f32[2,3,512], index: 2, kind: input, shape index: {}, may-alias: {0,1,2}]   ;;  %s2254_s3 = inlined_call_operand.vmem [shape: f32[2,3,512], index: 3, kind: input, shape index: {}, may-alias: {3,4,5}]   ;;  %s2255_s4 = inlined_call_operand.vmem [shape: f32[2,3,512], index: 4, kind: input, shape index: {}, may-alias: {3,4,5}]   ;;  %s2256_s5 = inlined_call_operand.vmem [shape: f32[2,3,512], index: 5, kind: input, shape index: {}, may-alias: {3,4,5}]   ;;  %s2257_s6 = inlined_call_operand.vmem [shape: f32[3,1], index: 6, kind: input, shape index: {}]   ;;  %s2258_s7 = inlined_call_operand.vmem [shape: f32[3,1], index: 7, kind: input, shape index: {}]   ;;  %s2259_s8 = inlined_call_operand.vmem [shape: f32[3,1], index: 8, kind: input, shape index: {}]   ;;  %s2260_s9 = inlined_call_operand.vmem [shape: f32[3,1], index: 9, kind: input, shape index: {}]   ;;  %s2261_s10 = inlined_call_operand.vmem [shape: bf16[3,6,3], index: 10, kind: input, shape index: {}]   ;;  %s2262_s11 = inlined_call_operand.vmem [shape: bf16[5,5,3], index: 11, kind: input, shape index: {}]   ;;  %s2263_s12 = inlined_call_operand.vmem [shape: f32[2,6,512], index: 12, kind: output, shape index: {0}]   ;;  %s2264_s13 = inlined_call_operand.vmem [shape: f32[2,5,512], index: 13, kind: output, shape index: {1}]   ;;  %s2265_s14 = inlined_call_operand.vmem [shape: f32[2,4,6,2], index: 14, kind: output, shape index: {2}]   ;;  %s2266_s15 = inlined_call_operand.vmem [shape: f32[2,4,5,2], index: 15, kind: output, shape index: {3}]  }
   0x1   :  { %2270 = sst [smem:[#allocation7_spill]] %s2257_s6  ;;  %s2046_s20 = smov 0  }
   0x2   :  { %2271 = sst [smem:[#allocation8_spill]] %s2258_s7  ;;  %s2048_s21 = smov 0  }
   0x3   :  { %2272 = sst [smem:[#allocation9_spill]] %s2259_s8  ;;  %s2050_s22 = smov 0  }
   0x4   :  { %2273 = sst [smem:[#allocation10_spill]] %s2260_s9 }
   0x5   :  { %2274 = sst [smem:[#allocation11_spill]] %s2264_s13 }
   0x6   :  { %2275 = sst [smem:[#allocation12_spill]] %s2265_s14 }
   0x7   :  { %2276 = sst [smem:[#allocation13_spill]] %s2266_s15 }
   0x8 LB: > { %2277 = sst [smem:[#allocation2_spill]] %s1944_s20  ;;  %s35_s23 = sadd.s32 1, %s1944_s20  ;;  %s1952_s22 = sphi %s2050_s22, %s26_s22   ;;  %s1948_s21 = sphi %s2048_s21, %s2293_s21   ;;  %s1944_s20 = sphi %s2046_s20, %s2292_s20   ;;  %s1940_s19 = sphi %s2044_s19, %s2291_s19   ;;  %s1936_s18 = sphi %s2042_s18, %s2290_s18  }
   0x9   : > { %2278 = sst [smem:[#allocation3_spill]] %s1948_s21  ;;  %s38_s24 = sadd.s32 1, %s1948_s21 }
   0xa   : > { %2279 = sst [smem:[#allocation4_spill]] %s1952_s22  ;;  %p36_p0 = scmp.ge.s32.totalorder %s35_s23, 4 }
   0xb   : > { %p1689_p1 = scmp.ge.s32.totalorder %s1952_s22, 1  ;;  %p592_p2 = scmp.lt.s32.totalorder %s1952_s22, 9 }
   0xc   : > { %s2295_s23 = smov (%p36_p0, %s35_s23), 0  ;;  %s2297_s24 = smov (!%p36_p0, %s38_s24), %s1948_s21 }
   0xd   : > { %2280 = sst [smem:[#allocation5_spill]] %s2295_s23  ;;  %p593_p3 = pnand %p1689_p1, %p592_p2 }
   0xe   : > { %p40_p4 = scmp.ge.s32.totalorder %s2297_s24, 2  ;;  %s2282_s8 = sld [smem:[#allocation9_spill]] (!%p593_p3)  ;;  %v1954_v2 = vmov (!%p593_p3), 0   ;;  %v1955_v5 = vmov (!%p593_p3), 0.0   ;;  %vm1956_vm0 = vmmov (!%p593_p3), 0   ;;  %vm877_vm1 = vcmask (!%p593_p3), 1040384  }
   0xf   : > { %596 = sbr.rel (%p593_p3) target bundleno = 684 (0x2ac), region = 68  ;;  %s2283_s6 = sld [smem:[#allocation7_spill]] (!%p593_p3)  ;;  %1883 = vset.pattern.permute.xlu1 (!%p593_p3), %v1954_v2  ;;  %1882 = vset.pattern.permute.xlu0 (!%p593_p3), %v1954_v2  ;;  %vm878_vm2 = vcmask (!%p593_p3), 1041408   ;;  %v1957_v33 = vmov (!%p593_p3), 65535   ;;  %v1729_v43 = vld [vmem:[%s2261_s10 + $0x4] sm:$0x7] (!%p593_p3)  ;;  %v827_v44 = vlaneseq (!%p593_p3) }
  0x10   : > { %s2299_s24 = smov (%p40_p4, %s2297_s24), 0  ;;  %s2284_s9 = sld [smem:[#allocation10_spill]] (!%p593_p3)  ;;  %1765 = vmatprep.subr.bf16.mxu0 (!%p593_p3), %v1955_v5  ;;  %1789 = vmatprep.subr.bf16.mxu1 (!%p593_p3), %v1955_v5  ;;  %v879_v34 = vsel (!%p593_p3), %vm877_vm1, 4294967295, %v1957_v33  ;;  %vm873_vm3 = vcmask (!%p593_p3), 23552   ;;  %v1739_v33 = vld [vmem:[%s2262_s11 + $0xc] sm:$0x7] (!%p593_p3) }
  0x11   : > { %2281 = sst [smem:[#allocation6_spill]] %s2299_s24  ;;  %s2285_s7 = sld [smem:[#allocation8_spill]] (!%p593_p3)  ;;  %1767 = vmatprep.mubr.msk.bf16.mxu0 (!%p593_p3), %vm1956_vm0, %v1955_v5  ;;  %1791 = vmatprep.mubr.msk.bf16.mxu1 (!%p593_p3), %vm1956_vm0, %v1955_v5  ;;  %v2124_v39 = vsel (!%p593_p3), %vm878_vm2, %v879_v34, 0  ;;  %v2136_v45 = vand.u32 (!%p593_p3), 127, %v827_v44  ;;  %vm1341_vm12 = vcmask (!%p593_p3), 1045504   ;;  %vm1353_vm13 = vcmask (!%p593_p3), 1044480  }
  0x12   : > { %s1690_s25 = sadd.s32 (!%p593_p3), 4294967295, %s1936_s18  ;;  %s744_s26 = sadd.s32 (!%p593_p3), 1, %s1936_s18  ;;  %vm1349_vm14 = vcmask (!%p593_p3), 7168   ;;  %vm1351_vm15 = vcmask (!%p593_p3), 13312  }
  0x13   : > { %p723_p5 = scmp.gt.s32.totalorder (!%p593_p3), %s1690_s25, 0  ;;  %p725_p6 = scmp.lt.s32.totalorder (!%p593_p3), %s1940_s19, 1  ;;  %vm1060_vm4 = vcmp.ge.s32.totalorder (!%p593_p3), %v2136_v45, 2  ;;  %vm860_vm5 = vcmp.ge.s32.totalorder (!%p593_p3), %v2136_v45, 1  ;;  %vm974_vm8 = vcmp.lt.s32.totalorder (!%p593_p3), %v2136_v45, 127  ;;  %vm1281_vm10 = vcmp.lt.s32.totalorder (!%p593_p3), %v2136_v45, 126 }
  0x14   : > { %v1032_v0 = vld [vmem:[%s2282_s8] sm:$0x7] (!%p593_p3)  ;;  %p1691_p7 = scmp.lt.s32.totalorder (!%p593_p3), %s1690_s25, 3  ;;  %p745_p8 = scmp.lt.s32.totalorder (!%p593_p3), %s744_s26, 3 }
  0x15   : > { %v832_v1 = vld [vmem:[%s2283_s6] sm:$0x7] (!%p593_p3)  ;;  %1037 = vperm.xlu0 (!%p593_p3), %1882, %v1032_v0   ;;  %p738_p9 = scmp.lt.s32.totalorder (!%p593_p3), %s1936_s18, 3  ;;  %s2287_s22 = sld [smem:[#allocation12_spill]] (!%p593_p3) }
  0x16   : > { %837 = vperm.xlu1 %1883, %v832_v1   ;;  %v1033_v3 = vld [vmem:[%s2284_s9] sm:$0x7]  ;;  %s2301_s25 = smov (!%p723_p5, %s1690_s25), 0  ;;  %s2303_s19 = smov (!%p725_p6, %s1940_s19), 1 }
  0x17   : > { %v833_v4 = vld [vmem:[%s2285_s7] sm:$0x7]  ;;  %s2305_s26 = smov (!%p745_p8, %s744_s26), 3  ;;  %s2307_s25 = smov (!%p1691_p7, %s2301_s25), 3 }
  0x18   : > { %s1696_s27 = sshll.u32 %s2303_s19, 2  ;;  %s2309_s26 = smov (!%p745_p8, %s2305_s26), 3 }
  0x19   : > { %1043 = vperm.xlu0 %1882, %v1033_v3   ;;  %s739_s28 = scalar_select %p738_p9, %s1936_s18, 3 }
  0x1a   : > { %843 = vperm.xlu1 %1883, %v833_v4   ;;  %s730_s29 = sadd.s32 %s2307_s25, %s1696_s27  ;;  %s752_s16 = sadd.s32 %s1696_s27, %s2309_s26 }
  0x1b   : > { %s2100_s30 = sadd.s32 %s1696_s27, %s739_s28  ;;  %s1697_s17 = sshll.u32 %s730_s29, 2 }
  0x1c   : > { %s1699_s6 = sshll.u32 %s2100_s30, 2  ;;  %s1704_s7 = sshll.u32 %s752_s16, 2 }
  0x1d   : > { %s768_s24 = scalar_lea.vmem %s2254_s3, %s1697_s17  ;;  %s732_s20 = scalar_lea.vmem %s2251_s0, %s1697_s17 }
  0x1e   : > { %s743_s15 = scalar_lea.vmem %s2252_s1, %s1699_s6  ;;  %s754_s14 = scalar_lea.vmem %s2253_s2, %s1704_s7  ;;  %v834_v6 = vld [vmem:[%s732_s20] sm:$0x7] }
  0x1f   : > { %s779_s29 = scalar_lea.vmem %s2255_s4, %s1699_s6  ;;  %s790_s8 = scalar_lea.vmem %s2256_s5, %s1704_s7  ;;  %v848_v7 = vld [vmem:[%s743_s15] sm:$0x7] }
  0x20   : > { %v852_v8 = vld [vmem:[%s754_s14] sm:$0x7]  ;;  %s1958_s6 = smov 2   ;;  %s1959_s7 = smov 1  }
  0x21   : > { %v1034_v10 = vld [vmem:[%s768_s24] sm:$0x7]  ;;  %s1960_s14 = smov 127   ;;  %s1961_s15 = smov 126  }
  0x22   : > { %v1048_v11 = vld [vmem:[%s779_s29] sm:$0x7]  ;;  %s1728_s20 = sshll.u32 %s1936_s18, 7  ;;  %s2288_s19 = sld [smem:[#allocation13_spill]] }
  0x23   : > { %v1052_v12 = vld [vmem:[%s790_s8] sm:$0x7]  ;;  %v830_v46 = vstv %s1728_s20 }
  0x24   : > { %v2139_v47 = vadd.s32 %v830_v46, %v2136_v45 }
  0x26   : > { %vm1064_vm6 = vcmp.ge.s32.totalorder %v2139_v47, 2  ;;  %vm864_vm7 = vcmp.ge.s32.totalorder %v2139_v47, 1  ;;  %vm978_vm9 = vcmp.lt.s32.totalorder %v2139_v47, 511  ;;  %vm1285_vm11 = vcmp.lt.s32.totalorder %v2139_v47, 510 }
  0x94   : > { %v1038_v9 = vpop.permute.xlu0 %1037 }
  0x95   : > { %v838_v13 = vpop.permute.xlu1 %837  ;;  %v1040_v17 = vmul.f32 %v1038_v9, %v1034_v10  ;;  %v1049_v18 = vmul.f32 %v1048_v11, %v1038_v9  ;;  %v1053_v19 = vmul.f32 %v1052_v12, %v1038_v9  ;;  %v1068_v9 = vld [vmem:[%s2262_s11] sm:$0x7] }
  0x96   : > { %v840_v14 = vmul.f32 %v838_v13, %v834_v6  ;;  %v849_v15 = vmul.f32 %v848_v7, %v838_v13  ;;  %v853_v16 = vmul.f32 %v852_v8, %v838_v13  ;;  %v868_v13 = vld [vmem:[%s2261_s10] sm:$0x7] }
  0x98   : > { %v1044_v20 = vpop.permute.xlu0 %1043 }
  0x99   : > { %v844_v21 = vpop.permute.xlu1 %843  ;;  %v1046_v22 = vadd.f32 %v1044_v20, %v1040_v17  ;;  %v1050_v23 = vadd.f32 %v1049_v18, %v1044_v20  ;;  %v1054_v24 = vadd.f32 %v1053_v19, %v1044_v20 }
  0x9a   : > { %v846_v25 = vadd.f32 %v844_v21, %v840_v14  ;;  %v850_v26 = vadd.f32 %v849_v15, %v844_v21  ;;  %v854_v27 = vadd.f32 %v853_v16, %v844_v21 }
  0x9b   : > { %v1047_v28 = vmax.f32 %v1046_v22, 0.0  ;;  %v2121_v29 = vmax.f32 %v1050_v23, 0.0  ;;  %v1055_v35 = vmax.f32 %v1054_v24, 0.0 }
  0x9c   : > { %v847_v30 = vmax.f32 %v846_v25, 0.0  ;;  %v851_v31 = vmax.f32 %v850_v26, 0.0  ;;  %v855_v32 = vmax.f32 %v854_v27, 0.0  ;;  %v1737_v25 = vld [vmem:[%s2262_s11 + $0x8] sm:$0x7] }
  0x9d   : > { %v1884_v36 = vpack.i.bf16 %v1047_v28, %v2121_v29  ;;  %v1894_v42 = vpack.i.bf16 %v1055_v35, %v2121_v29  ;;  %v1173_v1 = vpack.c.bf16 %v2121_v29, %v2121_v29  ;;  %v1732_v26 = vld [vmem:[%s2261_s10 + $0x8] sm:$0x7]  ;;  %v1741_v35 = vld [vmem:[%s2262_s11 + $0x10] sm:$0x7] }
  0x9e   : > { %v1889_v37 = vpack.i.bf16 %v847_v30, %v851_v31  ;;  %v872_v38 = vpack.c.bf16 %v851_v31, %v851_v31  ;;  %v1899_v40 = vpack.i.bf16 %v855_v32, %v851_v31  ;;  %v1734_v31 = vld [vmem:[%s2262_s11 + $0x4] sm:$0x7] }
  0x9f   : > { %1885 = vrot.lane.b32.xlu0 %v1884_v36, %s1958_s6  ;;  %v1178_v14 = vand.u32 %v1173_v1, %v2124_v39  ;;  %s2218_s6 = sshll.u32 %s2100_s30, 3 }
  0xa0   : > { %1890 = vrot.lane.b32.xlu1 %v1889_v37, %s1959_s7  ;;  %v882_v41 = vand.u32 %v2124_v39, %v872_v38  ;;  %s801_s13 = scalar_lea.vmem %s2263_s12, %s2218_s6  ;;  %s817_s23 = scalar_lea.vmem %s2287_s22, %s2218_s6 }
  0xa1   : > { %s825_s25 = scalar_lea.vmem %s2288_s19, %s2218_s6 }
  0xa2   : > { %1766 = vmatpush3.bf16.msra.mxu0 %v882_v41 }
  0xa3   : > { %1895 = vrot.lane.b32.xlu0 %v1894_v42, %s1960_s14  ;;  %1771 = vmatprep.subr.bf16.mxu0 %v1955_v5 }
  0xa4   : > { %1900 = vrot.lane.b32.xlu1 %v1899_v40, %s1960_s14 }
  0xa5   : > { %1768 = vmatmul.mubr.msk.bf16.vlgmr.msra.gmra.mrb[0].mxu0 %vm873_vm3, %v1729_v43 }
  0xa6   : > { %1773 = vmatprep.mubr.msk.bf16.mxu0 %vm1956_vm0, %v1955_v5 }
  0xa7   : > { %1905 = vrot.lane.b32.xlu0 %v1884_v36, %s1959_s7 }
  0xa8   : > { %1910 = vrot.lane.b32.xlu1 %v1894_v42, %s1961_s15  ;;  %s2286_s15 = sld [smem:[#allocation11_spill]] }
  0xae   : > { %s809_s20 = scalar_lea.vmem %s2286_s15, %s2218_s6 }
 0x111   : > { %v1886_v48 = vpop.permute.xlu0 %1885 }
 0x112   : > { %v1888_v49 = vunpack.i.h.bf16 %v1886_v48  ;;  %v1887_v50 = vunpack.i.l.bf16 %v1886_v48  ;;  %v1891_v51 = vpop.permute.xlu1 %1890 }
 0x113   : > { %v1893_v52 = vunpack.i.h.bf16 %v1891_v51  ;;  %v1892_v53 = vunpack.i.l.bf16 %v1891_v51 }
 0x114   : > { %v1063_v54 = vsel %vm1060_vm4, %v1887_v50, %v1888_v49 }
 0x115   : > { %v863_v55 = vsel %vm860_vm5, %v1892_v53, %v1893_v52  ;;  %v1896_v56 = vpop.permute.xlu0 %1895  ;;  %v1067_v57 = vsel %vm1064_vm6, %v1063_v54, 0.0 }
 0x116   : > { %v867_v58 = vsel %vm864_vm7, %v863_v55, 0.0  ;;  %v1901_v59 = vpop.permute.xlu1 %1900  ;;  %v1069_v60 = vpack.c.bf16 %v1067_v57, %v1067_v57  ;;  %v1898_v6 = vunpack.i.h.bf16 %v1896_v56  ;;  %v1897_v7 = vunpack.i.l.bf16 %v1896_v56 }
 0x117   : > { %v869_v61 = vpack.c.bf16 %v867_v58, %v867_v58  ;;  %v1903_v62 = vunpack.i.h.bf16 %v1901_v59  ;;  %v1902_v63 = vunpack.i.l.bf16 %v1901_v59 }
 0x118   : > { %v1129_v0 = vand.u32 %v1069_v60, %v2124_v39  ;;  %v1225_v16 = vsel %vm974_vm8, %v1897_v7, %v1898_v6 }
 0x119   : > { %v977_v2 = vsel %vm974_vm8, %v1902_v63, %v1903_v62  ;;  %v1906_v3 = vpop.permute.xlu0 %1905  ;;  %v928_v4 = vand.u32 %v2124_v39, %v869_v61  ;;  %v1226_v18 = vsel %vm978_vm9, %v1225_v16, 0.0 }
 0x11a   : > { %v981_v8 = vsel %vm978_vm9, %v977_v2, 0.0  ;;  %1790 = vmatpush3.bf16.msra.mxu1 %v1129_v0  ;;  %v1908_v11 = vunpack.i.h.bf16 %v1906_v3  ;;  %v1907_v12 = vunpack.i.l.bf16 %v1906_v3  ;;  %v1911_v20 = vpop.permute.xlu1 %1910  ;;  %v1229_v21 = vpack.c.bf16 %v1226_v18, %v1226_v18 }
 0x11b   : > { %v984_v10 = vpack.c.bf16 %v981_v8, %v981_v8  ;;  %1772 = vmatpush3.bf16.msra.mxu0 %v928_v4  ;;  %1795 = vmatprep.subr.bf16.mxu1 %v1955_v5  ;;  %v1913_v23 = vunpack.i.h.bf16 %v1911_v20  ;;  %v1912_v24 = vunpack.i.l.bf16 %v1911_v20 }
 0x11c   : > { %1777 = vmatprep.subr.bf16.mxu0 %v1955_v5  ;;  %v1074_v17 = vsel %vm860_vm5, %v1907_v12, %v1908_v11  ;;  %v1234_v27 = vand.u32 %v1229_v21, %v2124_v39 }
 0x11d   : > { %1792 = vmatmul.mubr.msk.bf16.vlgmr.msra.gmra.mrb[0].mxu1 %vm873_vm3, %v1068_v9  ;;  %v989_v15 = vand.u32 %v984_v10, %v2124_v39  ;;  %v1075_v19 = vsel %vm864_vm7, %v1074_v17, 0.0  ;;  %v1284_v29 = vsel %vm1281_vm10, %v1912_v24, %v1913_v23 }
 0x11e   : > { %1774 = vmatmul.mubr.msk.bf16.vlgmr.msra.gmra.mrb[0].mxu0 %vm873_vm3, %v868_v13  ;;  %1796 = vmatpush3.bf16.msra.mxu1 %v1178_v14  ;;  %v1078_v22 = vpack.c.bf16 %v1075_v19, %v1075_v19  ;;  %v1288_v30 = vsel %vm1285_vm11, %v1284_v29, 0.0 }
 0x11f   : > { %1778 = vmatpush3.bf16.msra.mxu0 %v989_v15  ;;  %1779 = vmatprep.mubr.msk.bf16.mxu0 %vm1956_vm0, %v1955_v5  ;;  %v1291_v32 = vpack.c.bf16 %v1288_v30, %v1288_v30 }
 0x120   : > { %1783 = vmatprep.subr.bf16.mxu0 %v1955_v5  ;;  %1797 = vmatprep.mubr.msk.bf16.mxu1 %vm1956_vm0, %v1955_v5  ;;  %v1083_v28 = vand.u32 %v1078_v22, %v2124_v39 }
 0x121   : > { %1801 = vmatprep.subr.bf16.mxu1 %v1955_v5  ;;  %v1296_v34 = vand.u32 %v1291_v32, %v2124_v39 }
 0x129   : > { %1798 = vmatmul.mubr.msk.bf16.vlgmr.msra.gmra.mrb[0].mxu1 %vm873_vm3, %v1737_v25 }
 0x12a   : > { %1780 = vmatmul.mubr.msk.bf16.vlgmr.msra.gmra.mrb[0].mxu0 %vm873_vm3, %v1732_v26  ;;  %1802 = vmatpush3.bf16.msra.mxu1 %v1234_v27 }
 0x12b   : > { %1784 = vmatpush3.bf16.msra.mxu0 %v1083_v28  ;;  %1803 = vmatprep.mubr.msk.bf16.mxu1 %vm1956_vm0, %v1955_v5 }
 0x12c   : > { %1807 = vmatprep.subr.bf16.mxu1 %v1955_v5  ;;  %1785 = vmatprep.mubr.msk.bf16.mxu0 %vm1956_vm0, %v1955_v5 }
 0x132   : > { %1786 = vmatmul.mubr.msk.bf16.vlgmr.msra.gmra.mrb[4].mxu0 %vm873_vm3, %v1734_v31 }
 0x135   : > { %1804 = vmatmul.mubr.msk.bf16.vlgmr.msra.gmra.mrb[0].mxu1 %vm873_vm3, %v1739_v33 }
 0x136   : > { %1808 = vmatpush3.bf16.msra.mxu1 %v1296_v34  ;;  %1809 = vmatprep.mubr.msk.bf16.mxu1 %vm1956_vm0, %v1955_v5  ;;  %vm1362_vm0 = vcmask 12288  }
 0x141   : > { %1810 = vmatmul.mubr.msk.bf16.vlgmr.msra.gmra.mrb[0].mxu1 %vm873_vm3, %v1741_v35 }
 0x1fd   : > { %v1025_v36 = vpop.f32.mrb[0].mxu0 }
 0x1fe   : > { %1339 = vst [vmem:[%s801_s13] sm:$0x3f] %v1025_v36  ;;  %v1781_v37 = vpop.f32.mrb[1].mxu0  ;;  %v1342_v38 = vsel %vm1341_vm12, %v1025_v36, 0.0  ;;  %v1345_v5 = vmul.f32 %v1025_v36, %v1025_v36 }
 0x1ff   : > { %1343 = vadd.xlane.f32.xlu0 %v1342_v38  ;;  %v1028_v39 = vpop.f32.mrb[2].mxu0 }
 0x200   : > { %v1782_v40 = vpop.f32.mrb[3].mxu0  ;;  %v1346_v41 = vsel %vm1341_vm12, %v1345_v5, 0.0 }
 0x201   : > { %1347 = vadd.xlane.f32.xlu1 %v1346_v41 }
 0x205   : > { %v1119_v42 = vpop.f32.mrb[4].mxu0 }
 0x206   : > { %v1787_v43 = vpop.f32.mrb[5].mxu0 }
 0x207   : > { %v1122_v44 = vpop.f32.mrb[6].mxu0 }
 0x208   : > { %v1788_v45 = vpop.f32.mrb[7].mxu0 }
 0x214   : > { %v1332_v46 = vpop.f32.mrb[0].mxu1 }
 0x215   : > { %v1813_v47 = vadd.f32 %v1332_v46, %v1119_v42  ;;  %v1811_v48 = vpop.f32.mrb[1].mxu1 }
 0x216   : > { %v1335_v49 = vpop.f32.mrb[2].mxu1 }
 0x217   : > { %1340 = vst [vmem:[%s809_s20] sm:$0x1f] %v1813_v47  ;;  %v1812_v50 = vpop.f32.mrb[3].mxu1  ;;  %v1354_v51 = vsel %vm1353_vm13, %v1813_v47, 0.0  ;;  %v1357_v52 = vmul.f32 %v1813_v47, %v1813_v47 }
 0x218   : > { %1355 = vadd.xlane.f32.xlu0 %v1354_v51 }
 0x219   : > { %v1358_v53 = vsel %vm1353_vm13, %v1357_v52, 0.0 }
 0x21c   : > { %1359 = vadd.xlane.f32.xlu0 %v1358_v53 }
 0x28c   : > { %v1344_v54 = vpop.xlane.xlu0 %1343 }
 0x28e   : > { %v1348_v55 = vpop.xlane.xlu1 %1347 }
 0x28f   : > { %v1350_v56 = vsel %vm1349_vm14, %v1344_v54, %v1348_v55 }
 0x290   : > { %1352 = vst.msk [vmem:[%s817_s23] sm:$0x3f] %vm1351_vm15, %v1350_v56 }
 0x2a5   : > { %v1356_v57 = vpop.xlane.xlu0 %1355 }
 0x2a9   : > { %v1360_v58 = vpop.xlane.xlu0 %1359 }
 0x2aa   : > { %v1361_v59 = vsel %vm1349_vm14, %v1356_v57, %v1360_v58 }
 0x2ab   : > { %1363 = vst.msk [vmem:[%s825_s25] sm:$0x1f] %vm1362_vm0, %v1361_v59 }
 0x2ac PF: > { %s2289_s28 = sld [smem:[#allocation4_spill]]  ;;  %s2290_s18 = sld [smem:[#allocation2_spill]] }
 0x2ad   : > { %s2291_s19 = sld [smem:[#allocation3_spill]]  ;;  %s2292_s20 = sld [smem:[#allocation5_spill]] }
 0x2ae   : > { %s2293_s21 = sld [smem:[#allocation6_spill]] }
 0x2b2   : > { %s26_s22 = sadd.s32 1, %s2289_s28  }
 0x2b3   : > { %p23_p10 = scmp.ge.s32.totalorder %s26_s22, 10  }
 0x2b5   :  { %25 = sbr.rel (!%p23_p10) target bundleno = 8 (0x8), region = 155 }

</bundles_post_ra>
